<compile_context>
chip_gen: v7x
topology: tpu7x:2x2x1
jax: 0.10.0
libtpu: 0.0.40
codegen_flags: <defaults>
</compile_context>

<pallas_src>
import math

import jax
import jax.numpy as jnp
from jax import lax
from jax.experimental import pallas as pl
from jax.experimental.pallas import tpu as pltpu

# ---------------------------------------------------------------------------
# Module hyper-parameters + small demo sizes.
# ---------------------------------------------------------------------------
C_S = 32
C_Z = 16
C_HIDDEN = 16
NO_HEADS = 4
NO_QK_POINTS = 4      # present in __init__ but unused by the reference forward
NO_V_POINTS = 8       # present in __init__ but unused by the reference forward
INF = 1e5
EPS = 1e-8

B = 2                 # batch
N = 16                # sequence length

HC = NO_HEADS * C_HIDDEN
QK_SCALE = math.sqrt(1.0 / (3 * C_HIDDEN))


# ---------------------------------------------------------------------------
# Pallas kernel: single grid step, whole (flattened) batch + all heads fused.
# ---------------------------------------------------------------------------
def _attn_kernel(s_ref, mcol_ref, mrow_ref, bcol_ref, brow_ref,
                 wq_ref, bq_ref, wk_ref, bk_ref, wv_ref, bv_ref,
                 wout_ref, bout_ref, out_ref):
    # s      (B*N, C_S)     bf16   flattened single representation
    # mcol   (B*N, 1) f32 / mrow (1, B*N) f32   mask as column / row vectors
    # bcol   (B*N, 1) f32 / brow (1, B*N) f32   batch ids as column / row vecs
    # wq/wk/wv (H, C, C_S)  bf16 ; bq/bk/bv (H, 1, C) f32
    # wout   (H, C_S, C)    bf16 ; bout (1, C_S) f32
    # out    (B*N, C_S)     f32
    s = s_ref[...]                                            # bf16
    n_heads = wq_ref.shape[0]

    # Block-diagonal pairwise mask bias, built on the VPU from O(N) vectors.
    # Within a batch: inf*(m_i*m_j - 1) (reference formula).  Across batches:
    # -2*inf, strictly below every within-batch value, so exp() underflows to
    # exactly 0 and the per-batch softmax of the reference is preserved.
    same_batch = bcol_ref[...] == brow_ref[...]               # (BN, BN) bool
    bias = jnp.where(same_batch,
                     INF * (mcol_ref[...] * mrow_ref[...] - 1.0),
                     -2.0 * INF)                              # (BN, BN) f32

    def matT(x, w):
        # x @ w.T on the MXU (bf16 operands, f32 accumulation), no transpose.
        return lax.dot_general(x, w, (((1,), (1,)), ((), ())),
                               preferred_element_type=jnp.float32)

    acc = jnp.zeros(out_ref.shape, jnp.float32)
    for h in range(n_heads):                                  # static unroll
        qh = matT(s, wq_ref[h]) + bq_ref[h]                   # (BN, C) f32
        kh = matT(s, wk_ref[h]) + bk_ref[h]                   # (BN, C) f32
        vh = matT(s, wv_ref[h]) + bv_ref[h]                   # (BN, C) f32

        a = matT(qh.astype(jnp.bfloat16), kh.astype(jnp.bfloat16))
        a = a * QK_SCALE + bias                               # (BN, BN) f32
        # Softmax path stays in f32 (v5e has no bf16 VPU/EUP).
        m = jnp.max(a, axis=-1, keepdims=True)
        p = jnp.exp(a - m)
        p = p / jnp.sum(p, axis=-1, keepdims=True)            # exact; denom>=1

        oh = jnp.dot(p.astype(jnp.bfloat16), vh.astype(jnp.bfloat16),
                     preferred_element_type=jnp.float32)      # (BN, C)
        # Per-head output projection accumulated directly: no lane-axis concat.
        acc = acc + matT(oh.astype(jnp.bfloat16), wout_ref[h])  # (BN, C_S)

    out_ref[...] = acc + bout_ref[...]


def _full_spec(shape):
    zeros = (0,) * len(shape)
    return pl.BlockSpec(shape, lambda i, _z=zeros: _z)


def tmp_attention_forward(params, s, z, r, mask):
    """Matches Tmp_attention.forward; z and r are accepted but unused."""
    del z, r  # never referenced by the reference forward
    Bd, Nd, Cs = s.shape
    BN = Bd * Nd
    H, C = NO_HEADS, C_HIDDEN

    wq, bq = params["linear_q"]
    wkv, bkv = params["linear_kv"]
    wout, bout = params["linear_out"]

    # Per-head weight splitting (one-time XLA reshuffle, free) + bf16 for MXU.
    wq_h = wq.reshape(H, C, Cs).astype(jnp.bfloat16)                 # (H,C,Cs)
    wkv_r = wkv.reshape(H, 2 * C, Cs)
    wk_h = wkv_r[:, :C, :].astype(jnp.bfloat16)                      # (H,C,Cs)
    wv_h = wkv_r[:, C:, :].astype(jnp.bfloat16)                      # (H,C,Cs)
    wout_h = jnp.transpose(wout.reshape(Cs, H, C), (1, 0, 2)).astype(jnp.bfloat16)

    bq_h = bq.reshape(H, 1, C).astype(jnp.float32)
    bkv_r = bkv.reshape(H, 2 * C)
    bk_h = bkv_r[:, :C].reshape(H, 1, C).astype(jnp.float32)
    bv_h = bkv_r[:, C:].reshape(H, 1, C).astype(jnp.float32)
    bout2 = bout.reshape(1, Cs).astype(jnp.float32)

    # Flattened batch (single grid step) + O(N) mask / batch-id vectors.
    s_flat = s.reshape(BN, Cs).astype(jnp.bfloat16)
    maskf = mask.astype(jnp.float32)
    mcol = maskf.reshape(BN, 1)
    mrow = maskf.reshape(1, BN)
    bid = (jnp.arange(BN, dtype=jnp.int32) // Nd).astype(jnp.float32)
    bcol = bid.reshape(BN, 1)
    brow = bid.reshape(1, BN)

    out = pl.pallas_call(
        _attn_kernel,
        out_shape=jax.ShapeDtypeStruct((BN, Cs), jnp.float32),
        grid=(1,),
        in_specs=[
            _full_spec((BN, Cs)),        # s (flattened)
            _full_spec((BN, 1)),         # mask column vector
            _full_spec((1, BN)),         # mask row vector
            _full_spec((BN, 1)),         # batch-id column vector
            _full_spec((1, BN)),         # batch-id row vector
            _full_spec((H, C, Cs)),      # Wq per head
            _full_spec((H, 1, C)),       # bq per head
            _full_spec((H, C, Cs)),      # Wk per head
            _full_spec((H, 1, C)),       # bk per head
            _full_spec((H, C, Cs)),      # Wv per head
            _full_spec((H, 1, C)),       # bv per head
            _full_spec((H, Cs, C)),      # Wout per head
            _full_spec((1, Cs)),         # bout
        ],
        out_specs=_full_spec((BN, Cs)),
        compiler_params=pltpu.CompilerParams(
            dimension_semantics=("arbitrary",)),
    )(s_flat, mcol, mrow, bcol, brow,
      wq_h, bq_h, wk_h, bk_h, wv_h, bv_h, wout_h, bout2)

    return out.reshape(Bd, Nd, Cs)


# ---------------------------------------------------------------------------
# Pure-JAX reference (mirrors the torch forward op-for-op, f32) for validation.
# ---------------------------------------------------------------------------
def tmp_attention_reference(params, s, z, r, mask):
    del z, r
    Bd, Nd, _ = s.shape
    H, C = NO_HEADS, C_HIDDEN
    wq, bq = params["linear_q"]
    wkv, bkv = params["linear_kv"]
    wout, bout = params["linear_out"]

    q = (s @ wq.T + bq).reshape(Bd, Nd, H, C)
    kv = (s @ wkv.T + bkv).reshape(Bd, Nd, H, 2 * C)
    k, v = kv[..., :C], kv[..., C:]

    a = jnp.einsum("bihc,bjhc->bhij", q, k) * QK_SCALE
    sq_mask = INF * (mask[:, :, None] * mask[:, None, :] - 1.0)
    a = jax.nn.softmax(a + sq_mask[:, None], axis=-1)

    o = jnp.einsum("bhij,bjhc->bihc", a, v).reshape(Bd, Nd, H * C)
    return o @ wout.T + bout


# ---------------------------------------------------------------------------
# Deterministic synthetic parameters / inputs.
# ---------------------------------------------------------------------------
def make_params(key):
    keys = jax.random.split(key, 3)

    def lin(k, out_dim, in_dim):
        kw, kb = jax.random.split(k)
        w = jax.random.normal(kw, (out_dim, in_dim), jnp.float32) / math.sqrt(in_dim)
        b = 0.1 * jax.random.normal(kb, (out_dim,), jnp.float32)
        return (w, b)

    return {
        "linear_q": lin(keys[0], HC, C_S),
        "linear_kv": lin(keys[1], 2 * HC, C_S),
        # Reference uses init='final' (zeros); random here so the output — and
        # therefore the correctness check — is non-trivial.
        "linear_out": lin(keys[2], C_S, HC),
    }


if __name__ == "__main__":
    key = jax.random.PRNGKey(0)
    k_par, k_s, k_z, k_r1, k_r2, k_m = jax.random.split(key, 6)

    params = make_params(k_par)
    s = jax.random.normal(k_s, (B, N, C_S), jnp.float32)
    z = jax.random.normal(k_z, (B, N, N, C_Z), jnp.float32)        # unused by forward
    rots = jax.random.normal(k_r1, (B, N, 3, 3), jnp.float32)      # r is unused by forward
    trans = jax.random.normal(k_r2, (B, N, 3), jnp.float32)
    r = (rots, trans)
    mask = (jax.random.uniform(k_m, (B, N)) > 0.2).astype(jnp.float32)

    fwd = jax.jit(tmp_attention_forward)
    out = jax.block_until_ready(fwd(params, s, z, r, mask))

    ref = tmp_attention_reference(params, s, z, r, mask)
    assert out.shape == (B, N, C_S)
    assert bool(jnp.all(jnp.isfinite(out)))
    max_err = float(jnp.max(jnp.abs(out - ref)))
    # Tolerance accounts for bf16 MXU operands (f32 accumulation) vs the pure
    # f32 reference; structural bugs would show up as O(1) errors.
    if not jnp.allclose(out, ref, atol=5e-2, rtol=5e-2):
        raise AssertionError(f"kernel/reference mismatch, max abs err = {max_err}")
    print("KERNEL_OK")
</pallas_src>

<mosaic_0001>
module attributes {stable_mosaic.version = 11 : i64} {
  func.func @_attn_kernel(%arg0: i32, %arg1: memref<32x32xbf16, #tpu.memory_space<vmem>>, %arg2: memref<32x1xf32, #tpu.memory_space<vmem>>, %arg3: memref<1x32xf32, #tpu.memory_space<vmem>>, %arg4: memref<32x1xf32, #tpu.memory_space<vmem>>, %arg5: memref<1x32xf32, #tpu.memory_space<vmem>>, %arg6: memref<4x16x32xbf16, #tpu.memory_space<vmem>>, %arg7: memref<4x1x16xf32, #tpu.memory_space<vmem>>, %arg8: memref<4x16x32xbf16, #tpu.memory_space<vmem>>, %arg9: memref<4x1x16xf32, #tpu.memory_space<vmem>>, %arg10: memref<4x16x32xbf16, #tpu.memory_space<vmem>>, %arg11: memref<4x1x16xf32, #tpu.memory_space<vmem>>, %arg12: memref<4x32x16xbf16, #tpu.memory_space<vmem>>, %arg13: memref<1x32xf32, #tpu.memory_space<vmem>>, %arg14: memref<32x32xf32, #tpu.memory_space<vmem>>) attributes {dimension_semantics = [#tpu.dimension_semantics<arbitrary>], iteration_bounds = array<i64: 1>, scalar_prefetch = 0 : i64, scratch_operands = 0 : i64, tpu.core_type = #tpu.core_type<tc>, window_params = [{pipeline_mode = #tpu.pipeline_mode<synchronous>, transform_indices = @transform_0, window_bounds = array<i64: 32, 32>}, {pipeline_mode = #tpu.pipeline_mode<synchronous>, transform_indices = @transform_1, window_bounds = array<i64: 32, 1>}, {pipeline_mode = #tpu.pipeline_mode<synchronous>, transform_indices = @transform_2, window_bounds = array<i64: 1, 32>}, {pipeline_mode = #tpu.pipeline_mode<synchronous>, transform_indices = @transform_3, window_bounds = array<i64: 32, 1>}, {pipeline_mode = #tpu.pipeline_mode<synchronous>, transform_indices = @transform_4, window_bounds = array<i64: 1, 32>}, {pipeline_mode = #tpu.pipeline_mode<synchronous>, transform_indices = @transform_5, window_bounds = array<i64: 4, 16, 32>}, {pipeline_mode = #tpu.pipeline_mode<synchronous>, transform_indices = @transform_6, window_bounds = array<i64: 4, 1, 16>}, {pipeline_mode = #tpu.pipeline_mode<synchronous>, transform_indices = @transform_7, window_bounds = array<i64: 4, 16, 32>}, {pipeline_mode = #tpu.pipeline_mode<synchronous>, transform_indices = @transform_8, window_bounds = array<i64: 4, 1, 16>}, {pipeline_mode = #tpu.pipeline_mode<synchronous>, transform_indices = @transform_9, window_bounds = array<i64: 4, 16, 32>}, {pipeline_mode = #tpu.pipeline_mode<synchronous>, transform_indices = @transform_10, window_bounds = array<i64: 4, 1, 16>}, {pipeline_mode = #tpu.pipeline_mode<synchronous>, transform_indices = @transform_11, window_bounds = array<i64: 4, 32, 16>}, {pipeline_mode = #tpu.pipeline_mode<synchronous>, transform_indices = @transform_12, window_bounds = array<i64: 1, 32>}, {pipeline_mode = #tpu.pipeline_mode<synchronous>, transform_indices = @transform_13, window_bounds = array<i64: 32, 32>}]} {
    %c0 = arith.constant 0 : index
    %c0_0 = arith.constant 0 : index
    %0 = vector.load %arg1[%c0, %c0_0] : memref<32x32xbf16, #tpu.memory_space<vmem>>, vector<32x32xbf16>
    %c0_1 = arith.constant 0 : index
    %c0_2 = arith.constant 0 : index
    %1 = vector.load %arg4[%c0_1, %c0_2] : memref<32x1xf32, #tpu.memory_space<vmem>>, vector<32x1xf32>
    %c0_3 = arith.constant 0 : index
    %c0_4 = arith.constant 0 : index
    %2 = vector.load %arg5[%c0_3, %c0_4] : memref<1x32xf32, #tpu.memory_space<vmem>>, vector<1x32xf32>
    %3 = vector.broadcast %1 : vector<32x1xf32> to vector<32x32xf32>
    %4 = vector.broadcast %2 : vector<1x32xf32> to vector<32x32xf32>
    %5 = arith.cmpf oeq, %3, %4 : vector<32x32xf32>
    %c0_5 = arith.constant 0 : index
    %c0_6 = arith.constant 0 : index
    %6 = vector.load %arg2[%c0_5, %c0_6] : memref<32x1xf32, #tpu.memory_space<vmem>>, vector<32x1xf32>
    %c0_7 = arith.constant 0 : index
    %c0_8 = arith.constant 0 : index
    %7 = vector.load %arg3[%c0_7, %c0_8] : memref<1x32xf32, #tpu.memory_space<vmem>>, vector<1x32xf32>
    %8 = vector.broadcast %6 : vector<32x1xf32> to vector<32x32xf32>
    %9 = vector.broadcast %7 : vector<1x32xf32> to vector<32x32xf32>
    %10 = arith.mulf %8, %9 : vector<32x32xf32>
    %cst = arith.constant 1.000000e+00 : f32
    %11 = vector.broadcast %cst : f32 to vector<32x32xf32>
    %12 = arith.subf %10, %11 : vector<32x32xf32>
    %cst_9 = arith.constant 1.000000e+05 : f32
    %13 = vector.broadcast %cst_9 : f32 to vector<32x32xf32>
    %14 = arith.mulf %13, %12 : vector<32x32xf32>
    %cst_10 = arith.constant -2.000000e+05 : f32
    %15 = vector.broadcast %cst_10 : f32 to vector<32x32xf32>
    %16 = arith.select %5, %14, %15 : vector<32x32xi1>, vector<32x32xf32>
    %cst_11 = arith.constant 0.000000e+00 : f32
    %17 = vector.broadcast %cst_11 : f32 to vector<32x32xf32>
    %c0_12 = arith.constant 0 : index
    %c0_13 = arith.constant 0 : index
    %c0_14 = arith.constant 0 : index
    %18 = vector.load %arg6[%c0_12, %c0_13, %c0_14] : memref<4x16x32xbf16, #tpu.memory_space<vmem>>, vector<1x16x32xbf16>
    %19 = vector.shape_cast %18 : vector<1x16x32xbf16> to vector<16x32xbf16>
    %cst_15 = arith.constant dense<0.000000e+00> : vector<32x16xf32>
    %20 = tpu.matmul %0, %19, %cst_15 {dimension_numbers = #tpu.dot_dimension_numbers<[1], [1], [0], [0], [0, 0, 1, 0], [], []>} : vector<32x32xbf16>, vector<16x32xbf16>, vector<32x16xf32> -> vector<32x16xf32>
    %c0_16 = arith.constant 0 : index
    %c0_17 = arith.constant 0 : index
    %c0_18 = arith.constant 0 : index
    %21 = vector.load %arg7[%c0_16, %c0_17, %c0_18] : memref<4x1x16xf32, #tpu.memory_space<vmem>>, vector<1x1x16xf32>
    %22 = vector.shape_cast %21 : vector<1x1x16xf32> to vector<1x16xf32>
    %23 = vector.broadcast %22 : vector<1x16xf32> to vector<32x16xf32>
    %24 = arith.addf %20, %23 : vector<32x16xf32>
    %c0_19 = arith.constant 0 : index
    %c0_20 = arith.constant 0 : index
    %c0_21 = arith.constant 0 : index
    %25 = vector.load %arg8[%c0_19, %c0_20, %c0_21] : memref<4x16x32xbf16, #tpu.memory_space<vmem>>, vector<1x16x32xbf16>
    %26 = vector.shape_cast %25 : vector<1x16x32xbf16> to vector<16x32xbf16>
    %cst_22 = arith.constant dense<0.000000e+00> : vector<32x16xf32>
    %27 = tpu.matmul %0, %26, %cst_22 {dimension_numbers = #tpu.dot_dimension_numbers<[1], [1], [0], [0], [0, 0, 1, 0], [], []>} : vector<32x32xbf16>, vector<16x32xbf16>, vector<32x16xf32> -> vector<32x16xf32>
    %c0_23 = arith.constant 0 : index
    %c0_24 = arith.constant 0 : index
    %c0_25 = arith.constant 0 : index
    %28 = vector.load %arg9[%c0_23, %c0_24, %c0_25] : memref<4x1x16xf32, #tpu.memory_space<vmem>>, vector<1x1x16xf32>
    %29 = vector.shape_cast %28 : vector<1x1x16xf32> to vector<1x16xf32>
    %30 = vector.broadcast %29 : vector<1x16xf32> to vector<32x16xf32>
    %31 = arith.addf %27, %30 : vector<32x16xf32>
    %c0_26 = arith.constant 0 : index
    %c0_27 = arith.constant 0 : index
    %c0_28 = arith.constant 0 : index
    %32 = vector.load %arg10[%c0_26, %c0_27, %c0_28] : memref<4x16x32xbf16, #tpu.memory_space<vmem>>, vector<1x16x32xbf16>
    %33 = vector.shape_cast %32 : vector<1x16x32xbf16> to vector<16x32xbf16>
    %cst_29 = arith.constant dense<0.000000e+00> : vector<32x16xf32>
    %34 = tpu.matmul %0, %33, %cst_29 {dimension_numbers = #tpu.dot_dimension_numbers<[1], [1], [0], [0], [0, 0, 1, 0], [], []>} : vector<32x32xbf16>, vector<16x32xbf16>, vector<32x16xf32> -> vector<32x16xf32>
    %c0_30 = arith.constant 0 : index
    %c0_31 = arith.constant 0 : index
    %c0_32 = arith.constant 0 : index
    %35 = vector.load %arg11[%c0_30, %c0_31, %c0_32] : memref<4x1x16xf32, #tpu.memory_space<vmem>>, vector<1x1x16xf32>
    %36 = vector.shape_cast %35 : vector<1x1x16xf32> to vector<1x16xf32>
    %37 = vector.broadcast %36 : vector<1x16xf32> to vector<32x16xf32>
    %38 = arith.addf %34, %37 : vector<32x16xf32>
    %39 = arith.truncf %24 : vector<32x16xf32> to vector<32x16xbf16>
    %40 = arith.truncf %31 : vector<32x16xf32> to vector<32x16xbf16>
    %cst_33 = arith.constant dense<0.000000e+00> : vector<32x32xf32>
    %41 = tpu.matmul %39, %40, %cst_33 {dimension_numbers = #tpu.dot_dimension_numbers<[1], [1], [0], [0], [0, 0, 1, 0], [], []>} : vector<32x16xbf16>, vector<32x16xbf16>, vector<32x32xf32> -> vector<32x32xf32>
    %cst_34 = arith.constant 0.144337565 : f32
    %42 = vector.broadcast %cst_34 : f32 to vector<32x32xf32>
    %43 = arith.mulf %41, %42 : vector<32x32xf32>
    %44 = arith.addf %43, %16 : vector<32x32xf32>
    %cst_35 = arith.constant dense<0xFF800000> : vector<32xf32>
    %45 = vector.multi_reduction <maximumf>, %44, %cst_35 [1] : vector<32x32xf32> to vector<32xf32>
    %46 = vector.shape_cast %45 : vector<32xf32> to vector<32x1xf32>
    %47 = vector.broadcast %46 : vector<32x1xf32> to vector<32x32xf32>
    %48 = arith.subf %44, %47 : vector<32x32xf32>
    %49 = math.exp %48 : vector<32x32xf32>
    %cst_36 = arith.constant dense<0.000000e+00> : vector<32xf32>
    %50 = vector.multi_reduction <add>, %49, %cst_36 [1] : vector<32x32xf32> to vector<32xf32>
    %51 = vector.shape_cast %50 : vector<32xf32> to vector<32x1xf32>
    %52 = vector.broadcast %51 : vector<32x1xf32> to vector<32x32xf32>
    %53 = arith.divf %49, %52 : vector<32x32xf32>
    %54 = arith.truncf %53 : vector<32x32xf32> to vector<32x32xbf16>
    %55 = arith.truncf %38 : vector<32x16xf32> to vector<32x16xbf16>
    %cst_37 = arith.constant dense<0.000000e+00> : vector<32x16xf32>
    %56 = tpu.matmul %54, %55, %cst_37 {dimension_numbers = #tpu.dot_dimension_numbers<[1], [0], [0], [1], [0, 0, 1, 1], [], []>} : vector<32x32xbf16>, vector<32x16xbf16>, vector<32x16xf32> -> vector<32x16xf32>
    %57 = arith.truncf %56 : vector<32x16xf32> to vector<32x16xbf16>
    %c0_38 = arith.constant 0 : index
    %c0_39 = arith.constant 0 : index
    %c0_40 = arith.constant 0 : index
    %58 = vector.load %arg12[%c0_38, %c0_39, %c0_40] : memref<4x32x16xbf16, #tpu.memory_space<vmem>>, vector<1x32x16xbf16>
    %59 = vector.shape_cast %58 : vector<1x32x16xbf16> to vector<32x16xbf16>
    %cst_41 = arith.constant dense<0.000000e+00> : vector<32x32xf32>
    %60 = tpu.matmul %57, %59, %cst_41 {dimension_numbers = #tpu.dot_dimension_numbers<[1], [1], [0], [0], [0, 0, 1, 0], [], []>} : vector<32x16xbf16>, vector<32x16xbf16>, vector<32x32xf32> -> vector<32x32xf32>
    %61 = arith.addf %17, %60 : vector<32x32xf32>
    %c1 = arith.constant 1 : index
    %c0_42 = arith.constant 0 : index
    %c0_43 = arith.constant 0 : index
    %62 = vector.load %arg6[%c1, %c0_42, %c0_43] : memref<4x16x32xbf16, #tpu.memory_space<vmem>>, vector<1x16x32xbf16>
    %63 = vector.shape_cast %62 : vector<1x16x32xbf16> to vector<16x32xbf16>
    %cst_44 = arith.constant dense<0.000000e+00> : vector<32x16xf32>
    %64 = tpu.matmul %0, %63, %cst_44 {dimension_numbers = #tpu.dot_dimension_numbers<[1], [1], [0], [0], [0, 0, 1, 0], [], []>} : vector<32x32xbf16>, vector<16x32xbf16>, vector<32x16xf32> -> vector<32x16xf32>
    %c1_45 = arith.constant 1 : index
    %c0_46 = arith.constant 0 : index
    %c0_47 = arith.constant 0 : index
    %65 = vector.load %arg7[%c1_45, %c0_46, %c0_47] : memref<4x1x16xf32, #tpu.memory_space<vmem>>, vector<1x1x16xf32>
    %66 = vector.shape_cast %65 : vector<1x1x16xf32> to vector<1x16xf32>
    %67 = vector.broadcast %66 : vector<1x16xf32> to vector<32x16xf32>
    %68 = arith.addf %64, %67 : vector<32x16xf32>
    %c1_48 = arith.constant 1 : index
    %c0_49 = arith.constant 0 : index
    %c0_50 = arith.constant 0 : index
    %69 = vector.load %arg8[%c1_48, %c0_49, %c0_50] : memref<4x16x32xbf16, #tpu.memory_space<vmem>>, vector<1x16x32xbf16>
    %70 = vector.shape_cast %69 : vector<1x16x32xbf16> to vector<16x32xbf16>
    %cst_51 = arith.constant dense<0.000000e+00> : vector<32x16xf32>
    %71 = tpu.matmul %0, %70, %cst_51 {dimension_numbers = #tpu.dot_dimension_numbers<[1], [1], [0], [0], [0, 0, 1, 0], [], []>} : vector<32x32xbf16>, vector<16x32xbf16>, vector<32x16xf32> -> vector<32x16xf32>
    %c1_52 = arith.constant 1 : index
    %c0_53 = arith.constant 0 : index
    %c0_54 = arith.constant 0 : index
    %72 = vector.load %arg9[%c1_52, %c0_53, %c0_54] : memref<4x1x16xf32, #tpu.memory_space<vmem>>, vector<1x1x16xf32>
    %73 = vector.shape_cast %72 : vector<1x1x16xf32> to vector<1x16xf32>
    %74 = vector.broadcast %73 : vector<1x16xf32> to vector<32x16xf32>
    %75 = arith.addf %71, %74 : vector<32x16xf32>
    %c1_55 = arith.constant 1 : index
    %c0_56 = arith.constant 0 : index
    %c0_57 = arith.constant 0 : index
    %76 = vector.load %arg10[%c1_55, %c0_56, %c0_57] : memref<4x16x32xbf16, #tpu.memory_space<vmem>>, vector<1x16x32xbf16>
    %77 = vector.shape_cast %76 : vector<1x16x32xbf16> to vector<16x32xbf16>
    %cst_58 = arith.constant dense<0.000000e+00> : vector<32x16xf32>
    %78 = tpu.matmul %0, %77, %cst_58 {dimension_numbers = #tpu.dot_dimension_numbers<[1], [1], [0], [0], [0, 0, 1, 0], [], []>} : vector<32x32xbf16>, vector<16x32xbf16>, vector<32x16xf32> -> vector<32x16xf32>
    %c1_59 = arith.constant 1 : index
    %c0_60 = arith.constant 0 : index
    %c0_61 = arith.constant 0 : index
    %79 = vector.load %arg11[%c1_59, %c0_60, %c0_61] : memref<4x1x16xf32, #tpu.memory_space<vmem>>, vector<1x1x16xf32>
    %80 = vector.shape_cast %79 : vector<1x1x16xf32> to vector<1x16xf32>
    %81 = vector.broadcast %80 : vector<1x16xf32> to vector<32x16xf32>
    %82 = arith.addf %78, %81 : vector<32x16xf32>
    %83 = arith.truncf %68 : vector<32x16xf32> to vector<32x16xbf16>
    %84 = arith.truncf %75 : vector<32x16xf32> to vector<32x16xbf16>
    %cst_62 = arith.constant dense<0.000000e+00> : vector<32x32xf32>
    %85 = tpu.matmul %83, %84, %cst_62 {dimension_numbers = #tpu.dot_dimension_numbers<[1], [1], [0], [0], [0, 0, 1, 0], [], []>} : vector<32x16xbf16>, vector<32x16xbf16>, vector<32x32xf32> -> vector<32x32xf32>
    %cst_63 = arith.constant 0.144337565 : f32
    %86 = vector.broadcast %cst_63 : f32 to vector<32x32xf32>
    %87 = arith.mulf %85, %86 : vector<32x32xf32>
    %88 = arith.addf %87, %16 : vector<32x32xf32>
    %cst_64 = arith.constant dense<0xFF800000> : vector<32xf32>
    %89 = vector.multi_reduction <maximumf>, %88, %cst_64 [1] : vector<32x32xf32> to vector<32xf32>
    %90 = vector.shape_cast %89 : vector<32xf32> to vector<32x1xf32>
    %91 = vector.broadcast %90 : vector<32x1xf32> to vector<32x32xf32>
    %92 = arith.subf %88, %91 : vector<32x32xf32>
    %93 = math.exp %92 : vector<32x32xf32>
    %cst_65 = arith.constant dense<0.000000e+00> : vector<32xf32>
    %94 = vector.multi_reduction <add>, %93, %cst_65 [1] : vector<32x32xf32> to vector<32xf32>
    %95 = vector.shape_cast %94 : vector<32xf32> to vector<32x1xf32>
    %96 = vector.broadcast %95 : vector<32x1xf32> to vector<32x32xf32>
    %97 = arith.divf %93, %96 : vector<32x32xf32>
    %98 = arith.truncf %97 : vector<32x32xf32> to vector<32x32xbf16>
    %99 = arith.truncf %82 : vector<32x16xf32> to vector<32x16xbf16>
    %cst_66 = arith.constant dense<0.000000e+00> : vector<32x16xf32>
    %100 = tpu.matmul %98, %99, %cst_66 {dimension_numbers = #tpu.dot_dimension_numbers<[1], [0], [0], [1], [0, 0, 1, 1], [], []>} : vector<32x32xbf16>, vector<32x16xbf16>, vector<32x16xf32> -> vector<32x16xf32>
    %101 = arith.truncf %100 : vector<32x16xf32> to vector<32x16xbf16>
    %c1_67 = arith.constant 1 : index
    %c0_68 = arith.constant 0 : index
    %c0_69 = arith.constant 0 : index
    %102 = vector.load %arg12[%c1_67, %c0_68, %c0_69] : memref<4x32x16xbf16, #tpu.memory_space<vmem>>, vector<1x32x16xbf16>
    %103 = vector.shape_cast %102 : vector<1x32x16xbf16> to vector<32x16xbf16>
    %cst_70 = arith.constant dense<0.000000e+00> : vector<32x32xf32>
    %104 = tpu.matmul %101, %103, %cst_70 {dimension_numbers = #tpu.dot_dimension_numbers<[1], [1], [0], [0], [0, 0, 1, 0], [], []>} : vector<32x16xbf16>, vector<32x16xbf16>, vector<32x32xf32> -> vector<32x32xf32>
    %105 = arith.addf %61, %104 : vector<32x32xf32>
    %c2 = arith.constant 2 : index
    %c0_71 = arith.constant 0 : index
    %c0_72 = arith.constant 0 : index
    %106 = vector.load %arg6[%c2, %c0_71, %c0_72] : memref<4x16x32xbf16, #tpu.memory_space<vmem>>, vector<1x16x32xbf16>
    %107 = vector.shape_cast %106 : vector<1x16x32xbf16> to vector<16x32xbf16>
    %cst_73 = arith.constant dense<0.000000e+00> : vector<32x16xf32>
    %108 = tpu.matmul %0, %107, %cst_73 {dimension_numbers = #tpu.dot_dimension_numbers<[1], [1], [0], [0], [0, 0, 1, 0], [], []>} : vector<32x32xbf16>, vector<16x32xbf16>, vector<32x16xf32> -> vector<32x16xf32>
    %c2_74 = arith.constant 2 : index
    %c0_75 = arith.constant 0 : index
    %c0_76 = arith.constant 0 : index
    %109 = vector.load %arg7[%c2_74, %c0_75, %c0_76] : memref<4x1x16xf32, #tpu.memory_space<vmem>>, vector<1x1x16xf32>
    %110 = vector.shape_cast %109 : vector<1x1x16xf32> to vector<1x16xf32>
    %111 = vector.broadcast %110 : vector<1x16xf32> to vector<32x16xf32>
    %112 = arith.addf %108, %111 : vector<32x16xf32>
    %c2_77 = arith.constant 2 : index
    %c0_78 = arith.constant 0 : index
    %c0_79 = arith.constant 0 : index
    %113 = vector.load %arg8[%c2_77, %c0_78, %c0_79] : memref<4x16x32xbf16, #tpu.memory_space<vmem>>, vector<1x16x32xbf16>
    %114 = vector.shape_cast %113 : vector<1x16x32xbf16> to vector<16x32xbf16>
    %cst_80 = arith.constant dense<0.000000e+00> : vector<32x16xf32>
    %115 = tpu.matmul %0, %114, %cst_80 {dimension_numbers = #tpu.dot_dimension_numbers<[1], [1], [0], [0], [0, 0, 1, 0], [], []>} : vector<32x32xbf16>, vector<16x32xbf16>, vector<32x16xf32> -> vector<32x16xf32>
    %c2_81 = arith.constant 2 : index
    %c0_82 = arith.constant 0 : index
    %c0_83 = arith.constant 0 : index
    %116 = vector.load %arg9[%c2_81, %c0_82, %c0_83] : memref<4x1x16xf32, #tpu.memory_space<vmem>>, vector<1x1x16xf32>
    %117 = vector.shape_cast %116 : vector<1x1x16xf32> to vector<1x16xf32>
    %118 = vector.broadcast %117 : vector<1x16xf32> to vector<32x16xf32>
    %119 = arith.addf %115, %118 : vector<32x16xf32>
    %c2_84 = arith.constant 2 : index
    %c0_85 = arith.constant 0 : index
    %c0_86 = arith.constant 0 : index
    %120 = vector.load %arg10[%c2_84, %c0_85, %c0_86] : memref<4x16x32xbf16, #tpu.memory_space<vmem>>, vector<1x16x32xbf16>
    %121 = vector.shape_cast %120 : vector<1x16x32xbf16> to vector<16x32xbf16>
    %cst_87 = arith.constant dense<0.000000e+00> : vector<32x16xf32>
    %122 = tpu.matmul %0, %121, %cst_87 {dimension_numbers = #tpu.dot_dimension_numbers<[1], [1], [0], [0], [0, 0, 1, 0], [], []>} : vector<32x32xbf16>, vector<16x32xbf16>, vector<32x16xf32> -> vector<32x16xf32>
    %c2_88 = arith.constant 2 : index
    %c0_89 = arith.constant 0 : index
    %c0_90 = arith.constant 0 : index
    %123 = vector.load %arg11[%c2_88, %c0_89, %c0_90] : memref<4x1x16xf32, #tpu.memory_space<vmem>>, vector<1x1x16xf32>
    %124 = vector.shape_cast %123 : vector<1x1x16xf32> to vector<1x16xf32>
    %125 = vector.broadcast %124 : vector<1x16xf32> to vector<32x16xf32>
    %126 = arith.addf %122, %125 : vector<32x16xf32>
    %127 = arith.truncf %112 : vector<32x16xf32> to vector<32x16xbf16>
    %128 = arith.truncf %119 : vector<32x16xf32> to vector<32x16xbf16>
    %cst_91 = arith.constant dense<0.000000e+00> : vector<32x32xf32>
    %129 = tpu.matmul %127, %128, %cst_91 {dimension_numbers = #tpu.dot_dimension_numbers<[1], [1], [0], [0], [0, 0, 1, 0], [], []>} : vector<32x16xbf16>, vector<32x16xbf16>, vector<32x32xf32> -> vector<32x32xf32>
    %cst_92 = arith.constant 0.144337565 : f32
    %130 = vector.broadcast %cst_92 : f32 to vector<32x32xf32>
    %131 = arith.mulf %129, %130 : vector<32x32xf32>
    %132 = arith.addf %131, %16 : vector<32x32xf32>
    %cst_93 = arith.constant dense<0xFF800000> : vector<32xf32>
    %133 = vector.multi_reduction <maximumf>, %132, %cst_93 [1] : vector<32x32xf32> to vector<32xf32>
    %134 = vector.shape_cast %133 : vector<32xf32> to vector<32x1xf32>
    %135 = vector.broadcast %134 : vector<32x1xf32> to vector<32x32xf32>
    %136 = arith.subf %132, %135 : vector<32x32xf32>
    %137 = math.exp %136 : vector<32x32xf32>
    %cst_94 = arith.constant dense<0.000000e+00> : vector<32xf32>
    %138 = vector.multi_reduction <add>, %137, %cst_94 [1] : vector<32x32xf32> to vector<32xf32>
    %139 = vector.shape_cast %138 : vector<32xf32> to vector<32x1xf32>
    %140 = vector.broadcast %139 : vector<32x1xf32> to vector<32x32xf32>
    %141 = arith.divf %137, %140 : vector<32x32xf32>
    %142 = arith.truncf %141 : vector<32x32xf32> to vector<32x32xbf16>
    %143 = arith.truncf %126 : vector<32x16xf32> to vector<32x16xbf16>
    %cst_95 = arith.constant dense<0.000000e+00> : vector<32x16xf32>
    %144 = tpu.matmul %142, %143, %cst_95 {dimension_numbers = #tpu.dot_dimension_numbers<[1], [0], [0], [1], [0, 0, 1, 1], [], []>} : vector<32x32xbf16>, vector<32x16xbf16>, vector<32x16xf32> -> vector<32x16xf32>
    %145 = arith.truncf %144 : vector<32x16xf32> to vector<32x16xbf16>
    %c2_96 = arith.constant 2 : index
    %c0_97 = arith.constant 0 : index
    %c0_98 = arith.constant 0 : index
    %146 = vector.load %arg12[%c2_96, %c0_97, %c0_98] : memref<4x32x16xbf16, #tpu.memory_space<vmem>>, vector<1x32x16xbf16>
    %147 = vector.shape_cast %146 : vector<1x32x16xbf16> to vector<32x16xbf16>
    %cst_99 = arith.constant dense<0.000000e+00> : vector<32x32xf32>
    %148 = tpu.matmul %145, %147, %cst_99 {dimension_numbers = #tpu.dot_dimension_numbers<[1], [1], [0], [0], [0, 0, 1, 0], [], []>} : vector<32x16xbf16>, vector<32x16xbf16>, vector<32x32xf32> -> vector<32x32xf32>
    %149 = arith.addf %105, %148 : vector<32x32xf32>
    %c3 = arith.constant 3 : index
    %c0_100 = arith.constant 0 : index
    %c0_101 = arith.constant 0 : index
    %150 = vector.load %arg6[%c3, %c0_100, %c0_101] : memref<4x16x32xbf16, #tpu.memory_space<vmem>>, vector<1x16x32xbf16>
    %151 = vector.shape_cast %150 : vector<1x16x32xbf16> to vector<16x32xbf16>
    %cst_102 = arith.constant dense<0.000000e+00> : vector<32x16xf32>
    %152 = tpu.matmul %0, %151, %cst_102 {dimension_numbers = #tpu.dot_dimension_numbers<[1], [1], [0], [0], [0, 0, 1, 0], [], []>} : vector<32x32xbf16>, vector<16x32xbf16>, vector<32x16xf32> -> vector<32x16xf32>
    %c3_103 = arith.constant 3 : index
    %c0_104 = arith.constant 0 : index
    %c0_105 = arith.constant 0 : index
    %153 = vector.load %arg7[%c3_103, %c0_104, %c0_105] : memref<4x1x16xf32, #tpu.memory_space<vmem>>, vector<1x1x16xf32>
    %154 = vector.shape_cast %153 : vector<1x1x16xf32> to vector<1x16xf32>
    %155 = vector.broadcast %154 : vector<1x16xf32> to vector<32x16xf32>
    %156 = arith.addf %152, %155 : vector<32x16xf32>
    %c3_106 = arith.constant 3 : index
    %c0_107 = arith.constant 0 : index
    %c0_108 = arith.constant 0 : index
    %157 = vector.load %arg8[%c3_106, %c0_107, %c0_108] : memref<4x16x32xbf16, #tpu.memory_space<vmem>>, vector<1x16x32xbf16>
    %158 = vector.shape_cast %157 : vector<1x16x32xbf16> to vector<16x32xbf16>
    %cst_109 = arith.constant dense<0.000000e+00> : vector<32x16xf32>
    %159 = tpu.matmul %0, %158, %cst_109 {dimension_numbers = #tpu.dot_dimension_numbers<[1], [1], [0], [0], [0, 0, 1, 0], [], []>} : vector<32x32xbf16>, vector<16x32xbf16>, vector<32x16xf32> -> vector<32x16xf32>
    %c3_110 = arith.constant 3 : index
    %c0_111 = arith.constant 0 : index
    %c0_112 = arith.constant 0 : index
    %160 = vector.load %arg9[%c3_110, %c0_111, %c0_112] : memref<4x1x16xf32, #tpu.memory_space<vmem>>, vector<1x1x16xf32>
    %161 = vector.shape_cast %160 : vector<1x1x16xf32> to vector<1x16xf32>
    %162 = vector.broadcast %161 : vector<1x16xf32> to vector<32x16xf32>
    %163 = arith.addf %159, %162 : vector<32x16xf32>
    %c3_113 = arith.constant 3 : index
    %c0_114 = arith.constant 0 : index
    %c0_115 = arith.constant 0 : index
    %164 = vector.load %arg10[%c3_113, %c0_114, %c0_115] : memref<4x16x32xbf16, #tpu.memory_space<vmem>>, vector<1x16x32xbf16>
    %165 = vector.shape_cast %164 : vector<1x16x32xbf16> to vector<16x32xbf16>
    %cst_116 = arith.constant dense<0.000000e+00> : vector<32x16xf32>
    %166 = tpu.matmul %0, %165, %cst_116 {dimension_numbers = #tpu.dot_dimension_numbers<[1], [1], [0], [0], [0, 0, 1, 0], [], []>} : vector<32x32xbf16>, vector<16x32xbf16>, vector<32x16xf32> -> vector<32x16xf32>
    %c3_117 = arith.constant 3 : index
    %c0_118 = arith.constant 0 : index
    %c0_119 = arith.constant 0 : index
    %167 = vector.load %arg11[%c3_117, %c0_118, %c0_119] : memref<4x1x16xf32, #tpu.memory_space<vmem>>, vector<1x1x16xf32>
    %168 = vector.shape_cast %167 : vector<1x1x16xf32> to vector<1x16xf32>
    %169 = vector.broadcast %168 : vector<1x16xf32> to vector<32x16xf32>
    %170 = arith.addf %166, %169 : vector<32x16xf32>
    %171 = arith.truncf %156 : vector<32x16xf32> to vector<32x16xbf16>
    %172 = arith.truncf %163 : vector<32x16xf32> to vector<32x16xbf16>
    %cst_120 = arith.constant dense<0.000000e+00> : vector<32x32xf32>
    %173 = tpu.matmul %171, %172, %cst_120 {dimension_numbers = #tpu.dot_dimension_numbers<[1], [1], [0], [0], [0, 0, 1, 0], [], []>} : vector<32x16xbf16>, vector<32x16xbf16>, vector<32x32xf32> -> vector<32x32xf32>
    %cst_121 = arith.constant 0.144337565 : f32
    %174 = vector.broadcast %cst_121 : f32 to vector<32x32xf32>
    %175 = arith.mulf %173, %174 : vector<32x32xf32>
    %176 = arith.addf %175, %16 : vector<32x32xf32>
    %cst_122 = arith.constant dense<0xFF800000> : vector<32xf32>
    %177 = vector.multi_reduction <maximumf>, %176, %cst_122 [1] : vector<32x32xf32> to vector<32xf32>
    %178 = vector.shape_cast %177 : vector<32xf32> to vector<32x1xf32>
    %179 = vector.broadcast %178 : vector<32x1xf32> to vector<32x32xf32>
    %180 = arith.subf %176, %179 : vector<32x32xf32>
    %181 = math.exp %180 : vector<32x32xf32>
    %cst_123 = arith.constant dense<0.000000e+00> : vector<32xf32>
    %182 = vector.multi_reduction <add>, %181, %cst_123 [1] : vector<32x32xf32> to vector<32xf32>
    %183 = vector.shape_cast %182 : vector<32xf32> to vector<32x1xf32>
    %184 = vector.broadcast %183 : vector<32x1xf32> to vector<32x32xf32>
    %185 = arith.divf %181, %184 : vector<32x32xf32>
    %186 = arith.truncf %185 : vector<32x32xf32> to vector<32x32xbf16>
    %187 = arith.truncf %170 : vector<32x16xf32> to vector<32x16xbf16>
    %cst_124 = arith.constant dense<0.000000e+00> : vector<32x16xf32>
    %188 = tpu.matmul %186, %187, %cst_124 {dimension_numbers = #tpu.dot_dimension_numbers<[1], [0], [0], [1], [0, 0, 1, 1], [], []>} : vector<32x32xbf16>, vector<32x16xbf16>, vector<32x16xf32> -> vector<32x16xf32>
    %189 = arith.truncf %188 : vector<32x16xf32> to vector<32x16xbf16>
    %c3_125 = arith.constant 3 : index
    %c0_126 = arith.constant 0 : index
    %c0_127 = arith.constant 0 : index
    %190 = vector.load %arg12[%c3_125, %c0_126, %c0_127] : memref<4x32x16xbf16, #tpu.memory_space<vmem>>, vector<1x32x16xbf16>
    %191 = vector.shape_cast %190 : vector<1x32x16xbf16> to vector<32x16xbf16>
    %cst_128 = arith.constant dense<0.000000e+00> : vector<32x32xf32>
    %192 = tpu.matmul %189, %191, %cst_128 {dimension_numbers = #tpu.dot_dimension_numbers<[1], [1], [0], [0], [0, 0, 1, 0], [], []>} : vector<32x16xbf16>, vector<32x16xbf16>, vector<32x32xf32> -> vector<32x32xf32>
    %193 = arith.addf %149, %192 : vector<32x32xf32>
    %c0_129 = arith.constant 0 : index
    %c0_130 = arith.constant 0 : index
    %194 = vector.load %arg13[%c0_129, %c0_130] : memref<1x32xf32, #tpu.memory_space<vmem>>, vector<1x32xf32>
    %195 = vector.broadcast %194 : vector<1x32xf32> to vector<32x32xf32>
    %196 = arith.addf %193, %195 : vector<32x32xf32>
    %c0_131 = arith.constant 0 : index
    %c0_132 = arith.constant 0 : index
    %197 = vector.load %arg14[%c0_131, %c0_132] : memref<32x32xf32, #tpu.memory_space<vmem>>, vector<32x32xf32>
    tpu.vector_store %arg14[%c0_131, %c0_132], %196 {strides = array<i32>} : memref<32x32xf32, #tpu.memory_space<vmem>>, vector<32x32xf32>,
    return
  }
  func.func @transform_0(%arg0: i32) -> (i32, i32) {
    %c0_i32 = arith.constant 0 : i32
    %c0_i32_0 = arith.constant 0 : i32
    %c0_i32_1 = arith.constant 0 : i32
    return %c0_i32, %c0_i32_0 : i32, i32
  }
  func.func @transform_1(%arg0: i32) -> (i32, i32) {
    %c0_i32 = arith.constant 0 : i32
    %c0_i32_0 = arith.constant 0 : i32
    %c0_i32_1 = arith.constant 0 : i32
    return %c0_i32, %c0_i32_0 : i32, i32
  }
  func.func @transform_2(%arg0: i32) -> (i32, i32) {
    %c0_i32 = arith.constant 0 : i32
    %c0_i32_0 = arith.constant 0 : i32
    %c0_i32_1 = arith.constant 0 : i32
    return %c0_i32, %c0_i32_0 : i32, i32
  }
  func.func @transform_3(%arg0: i32) -> (i32, i32) {
    %c0_i32 = arith.constant 0 : i32
    %c0_i32_0 = arith.constant 0 : i32
    %c0_i32_1 = arith.constant 0 : i32
    return %c0_i32, %c0_i32_0 : i32, i32
  }
  func.func @transform_4(%arg0: i32) -> (i32, i32) {
    %c0_i32 = arith.constant 0 : i32
    %c0_i32_0 = arith.constant 0 : i32
    %c0_i32_1 = arith.constant 0 : i32
    return %c0_i32, %c0_i32_0 : i32, i32
  }
  func.func @transform_5(%arg0: i32) -> (i32, i32, i32) {
    %c0_i32 = arith.constant 0 : i32
    %c0_i32_0 = arith.constant 0 : i32
    %c0_i32_1 = arith.constant 0 : i32
    %c0_i32_2 = arith.constant 0 : i32
    return %c0_i32, %c0_i32_0, %c0_i32_1 : i32, i32, i32
  }
  func.func @transform_6(%arg0: i32) -> (i32, i32, i32) {
    %c0_i32 = arith.constant 0 : i32
    %c0_i32_0 = arith.constant 0 : i32
    %c0_i32_1 = arith.constant 0 : i32
    %c0_i32_2 = arith.constant 0 : i32
    return %c0_i32, %c0_i32_0, %c0_i32_1 : i32, i32, i32
  }
  func.func @transform_7(%arg0: i32) -> (i32, i32, i32) {
    %c0_i32 = arith.constant 0 : i32
    %c0_i32_0 = arith.constant 0 : i32
    %c0_i32_1 = arith.constant 0 : i32
    %c0_i32_2 = arith.constant 0 : i32
    return %c0_i32, %c0_i32_0, %c0_i32_1 : i32, i32, i32
  }
  func.func @transform_8(%arg0: i32) -> (i32, i32, i32) {
    %c0_i32 = arith.constant 0 : i32
    %c0_i32_0 = arith.constant 0 : i32
    %c0_i32_1 = arith.constant 0 : i32
    %c0_i32_2 = arith.constant 0 : i32
    return %c0_i32, %c0_i32_0, %c0_i32_1 : i32, i32, i32
  }
  func.func @transform_9(%arg0: i32) -> (i32, i32, i32) {
    %c0_i32 = arith.constant 0 : i32
    %c0_i32_0 = arith.constant 0 : i32
    %c0_i32_1 = arith.constant 0 : i32
    %c0_i32_2 = arith.constant 0 : i32
    return %c0_i32, %c0_i32_0, %c0_i32_1 : i32, i32, i32
  }
  func.func @transform_10(%arg0: i32) -> (i32, i32, i32) {
    %c0_i32 = arith.constant 0 : i32
    %c0_i32_0 = arith.constant 0 : i32
    %c0_i32_1 = arith.constant 0 : i32
    %c0_i32_2 = arith.constant 0 : i32
    return %c0_i32, %c0_i32_0, %c0_i32_1 : i32, i32, i32
  }
  func.func @transform_11(%arg0: i32) -> (i32, i32, i32) {
    %c0_i32 = arith.constant 0 : i32
    %c0_i32_0 = arith.constant 0 : i32
    %c0_i32_1 = arith.constant 0 : i32
    %c0_i32_2 = arith.constant 0 : i32
    return %c0_i32, %c0_i32_0, %c0_i32_1 : i32, i32, i32
  }
  func.func @transform_12(%arg0: i32) -> (i32, i32) {
    %c0_i32 = arith.constant 0 : i32
    %c0_i32_0 = arith.constant 0 : i32
    %c0_i32_1 = arith.constant 0 : i32
    return %c0_i32, %c0_i32_0 : i32, i32
  }
  func.func @transform_13(%arg0: i32) -> (i32, i32) {
    %c0_i32 = arith.constant 0 : i32
    %c0_i32_0 = arith.constant 0 : i32
    %c0_i32_1 = arith.constant 0 : i32
    return %c0_i32, %c0_i32_0 : i32, i32
  }
}

</mosaic_0001>

<bundles_post_ra>
// kernel: tmp_attention_forward.1
= control target key start
LH: loop header
LB: loop body
LE: loop exit
PB: predicated region body
PF: predicated region fallthrough
CT: control target
= control target key end

     0   :  { %vm156_vm0 = vcmask 261120   ;;  %s3067_s0 = inlined_call_operand.vmem [shape: bf16[32,32], index: 0, kind: input, shape index: {}]   ;;  %s3068_s1 = inlined_call_operand.vmem [shape: f32[32,1], index: 1, kind: input, shape index: {}]   ;;  %s3069_s2 = inlined_call_operand.vmem [shape: f32[1,32], index: 2, kind: input, shape index: {}]   ;;  %s3070_s3 = inlined_call_operand.vmem [shape: f32[32,1], index: 3, kind: input, shape index: {}]   ;;  %s3071_s4 = inlined_call_operand.vmem [shape: f32[1,32], index: 4, kind: input, shape index: {}]   ;;  %s3072_s5 = inlined_call_operand.vmem [shape: bf16[4,16,32], index: 5, kind: input, shape index: {}]   ;;  %s3073_s6 = inlined_call_operand.vmem [shape: f32[4,1,16], index: 6, kind: input, shape index: {}]   ;;  %s3074_s7 = inlined_call_operand.vmem [shape: bf16[4,16,32], index: 7, kind: input, shape index: {}]   ;;  %s3075_s8 = inlined_call_operand.vmem [shape: f32[4,1,16], index: 8, kind: input, shape index: {}]   ;;  %s3076_s9 = inlined_call_operand.vmem [shape: bf16[4,16,32], index: 9, kind: input, shape index: {}]   ;;  %s3077_s10 = inlined_call_operand.vmem [shape: f32[4,1,16], index: 10, kind: input, shape index: {}]   ;;  %s3078_s11 = inlined_call_operand.vmem [shape: bf16[4,32,16], index: 11, kind: input, shape index: {}]   ;;  %s3079_s12 = inlined_call_operand.vmem [shape: f32[1,32], index: 12, kind: input, shape index: {}]   ;;  %s3080_s13 = inlined_call_operand.hbm [shape: f32[32,32], index: 13, kind: output, shape index: {}]  }
   0x1   :  { %v2440_v0 = vld [vmem:[%s3072_s5] sm:$0xff]   ;;  %v2646_v4 = vld [vmem:[%s3067_s0 + $0x8] sm:$0xff]  }
   0x2   :  { %v2632_v1 = vld [vmem:[%s3067_s0] sm:$0xff]   ;;  %2406 = vmatprep.subr.msk.bf16.mxu1 %vm156_vm0, %v2440_v0  ;;  %v164_v2 = vsel %vm156_vm0, %v2440_v0, 0 }
   0x3   :  { %2227 = vmatpush3.bf16.xpose.msra.mxu1 %v164_v2  ;;  %2228 = vmatprep.mubr.msk.bf16.mxu1 %vm156_vm0, %v2632_v1  ;;  %v2443_v3 = vld [vmem:[%s3074_s7] sm:$0xff]  }
   0x4   :  { %2240 = vmatprep.mubr.msk.bf16.mxu0 %vm156_vm0, %v2632_v1  ;;  %2407 = vmatprep.subr.msk.bf16.mxu1 %vm156_vm0, %v2443_v3  ;;  %v230_v5 = vsel %vm156_vm0, %v2443_v3, 0 }
   0xa   :  { %2229 = vmatmul.mubr.msk.bf16.vlgmr.msra.gmra.mrb[0].mxu1 %vm156_vm0, %v2646_v4 }
   0xb   :  { %2233 = vmatpush3.bf16.xpose.msra.mxu1 %v230_v5  ;;  %2234 = vmatprep.mubr.msk.bf16.mxu1 %vm156_vm0, %v2632_v1 }
   0xc   :  { %18 = vsyncpa [#allocation3], 0  ;;  %v85_v6 = vld [vmem:[%s3068_s1] sm:$0xff]  ;;  %v87_v7 = vld [vmem:[%s3068_s1 + $0x10] sm:$0xff]  ;;  %v2552_v8 = vmov 0   ;;  %vm351_vm1 = vcmask 130048  }
   0xd   :  { %2438 = vset.pattern.permute.xlu0 %v2552_v8  ;;  %2439 = vset.pattern.permute.xlu1 %v2552_v8  ;;  %v86_v9 = vld [vmem:[%s3068_s1 + $0x8] sm:$0xff]  ;;  %v88_v10 = vld [vmem:[%s3068_s1 + $0x18] sm:$0xff]  ;;  %v50_v11 = vld [vmem:[%s3070_s3] sm:$0xff] }
   0xe   :  { %92 = vperm.xlu0 %2438, %v85_v6   ;;  %102 = vperm.xlu1 %2439, %v87_v7   ;;  %v51_v12 = vld [vmem:[%s3070_s3 + $0x8] sm:$0xff]  ;;  %v52_v13 = vld [vmem:[%s3070_s3 + $0x10] sm:$0xff]  ;;  %v53_v14 = vld [vmem:[%s3070_s3 + $0x18] sm:$0xff] }
   0xf   :  { %v2020_v16 = vld [vmem:[%s3073_s6] ss:$0 sm:$0xff] }
  0x10   :  { %v2026_v27 = vld [vmem:[%s3075_s8] ss:$0 sm:$0xff] }
  0x11   :  { %v2444_v39 = vld [vmem:[%s3076_s9] sm:$0xff]  }
  0x12   :  { %2235 = vmatmul.mubr.msk.bf16.vlgmr.msra.gmra.mrb[4].mxu1 %vm156_vm0, %v2646_v4  ;;  %97 = vperm.xlu0 %2438, %v86_v9   ;;  %v296_v40 = vsel %vm156_vm0, %v2444_v39, 0  ;;  %v2015_v44 = vld [vmem:[%s3069_s2] ss:$0 sm:$0xff] }
  0x13   :  { %107 = vperm.xlu1 %2439, %v88_v10   ;;  %2408 = vmatprep.subr.msk.bf16.mxu0 %vm156_vm0, %v2444_v39  ;;  %v2014_v55 = vld [vmem:[%s3071_s4] ss:$0 sm:$0xff] }
  0x14   :  { %2239 = vmatpush3.bf16.xpose.msra.mxu0 %v296_v40 }
  0x16   :  { %57 = vperm.xlu0 %2438, %v50_v11  }
  0x17   :  { %62 = vperm.xlu1 %2439, %v51_v12  }
  0x1a   :  { %67 = vperm.xlu0 %2438, %v52_v13  }
  0x1b   :  { %72 = vperm.xlu1 %2439, %v53_v14   ;;  %2241 = vmatmul.mubr.msk.bf16.vlgmr.msra.gmra.mrb[0].mxu0 %vm156_vm0, %v2646_v4 }
  0x8d   :  { %v93_v41 = vpop.permute.xlu0 %92  ;;  %v103_v42 = vpop.permute.xlu1 %102 }
  0x8e   :  { %v116_v46 = vmul.f32 %v2015_v44, %v93_v41  ;;  %v118_v47 = vmul.f32 %v2015_v44, %v103_v42 }
  0x90   :  { %v2016_v50 = vadd.f32 -1.0, %v116_v46  ;;  %v2018_v52 = vadd.f32 -1.0, %v118_v47 }
  0x91   :  { %v98_v43 = vpop.permute.xlu0 %97 }
  0x92   :  { %v108_v45 = vpop.permute.xlu1 %107  ;;  %v117_v48 = vmul.f32 %v2015_v44, %v98_v43  ;;  %v124_v56 = vmul.f32 100000.0, %v2016_v50  ;;  %v126_v59 = vmul.f32 100000.0, %v2018_v52 }
  0x93   :  { %v119_v54 = vmul.f32 %v2015_v44, %v108_v45 }
  0x94   :  { %v2017_v53 = vadd.f32 -1.0, %v117_v48 }
  0x95   :  { %v58_v49 = vpop.permute.xlu0 %57  ;;  %v2019_v61 = vadd.f32 -1.0, %v119_v54  ;;  %v2446_v54 = vld [vmem:[%s3072_s5 + $0x8] sm:$0xff]  }
  0x96   :  { %v63_v51 = vpop.permute.xlu1 %62  ;;  %vm81_vm2 = vcmp.eq.f32.partialorder %v58_v49, %v2014_v55  ;;  %v125_v60 = vmul.f32 100000.0, %v2017_v53 }
  0x97   :  { %vm82_vm3 = vcmp.eq.f32.partialorder %v63_v51, %v2014_v55  ;;  %v2707_v5 = vsel %vm81_vm2, %v124_v56, -200000.0  ;;  %v127_v9 = vmul.f32 100000.0, %v2019_v61 }
  0x98   :  { %v2710_v10 = vsel %vm82_vm3, %v125_v60, -200000.0 }
  0x99   :  { %v68_v57 = vpop.permute.xlu0 %67 }
  0x9a   :  { %vm83_vm4 = vcmp.eq.f32.partialorder %v68_v57, %v2014_v55  ;;  %v73_v63 = vpop.permute.xlu1 %72 }
  0x9b   :  { %v2712_v11 = vsel %vm83_vm4, %v126_v59, -200000.0  ;;  %vm84_vm5 = vcmp.eq.f32.partialorder %v73_v63, %v2014_v55  ;;  %v2048_v55 = vld [vmem:[%s3075_s8 + $0x1] ss:$0 sm:$0xff] }
  0xdd   :  { %v2230_v15 = vpop.f32.mrb[0].mxu1 }
  0xde   :  { %v200_v17 = vpop.f32.mrb[1].mxu1  ;;  %v209_v19 = vadd.f32 %v2230_v15, %v2020_v16 }
  0xdf   :  { %v2231_v18 = vpop.f32.mrb[2].mxu1  ;;  %v201_v22 = vadd.f32 %v2020_v16, %v200_v17  ;;  %v2718_v17 = vsel %vm84_vm5, %v127_v9, -200000.0 }
  0xe0   :  { %v212_v20 = vadd.f32 %v2231_v18, %v2020_v16  ;;  %v203_v21 = vpop.f32.mrb[3].mxu1 }
  0xe1   :  { %v204_v23 = vadd.f32 %v2020_v16, %v203_v21  ;;  %v2445_v21 = vld [vmem:[%s3074_s7 + $0x8] sm:$0xff]  }
  0xe2   :  { %v348_v24 = vpack.c.bf16 %v212_v20, %v209_v19 }
  0xe3   :  { %v347_v25 = vpack.c.bf16 %v204_v23, %v201_v22  ;;  %v615_v22 = vsel %vm156_vm0, %v2445_v21, 0  ;;  %v2030_v23 = vld [vmem:[%s3077_s10] ss:$0 sm:$0xff] }
  0xe5   :  { %v2236_v26 = vpop.f32.mrb[4].mxu1  ;;  %2248 = vmatprep.mubr.msk.bf16.mxu1 %vm351_vm1, %v347_v25 }
  0xe6   :  { %v266_v28 = vpop.f32.mrb[5].mxu1  ;;  %v275_v30 = vadd.f32 %v2236_v26, %v2026_v27 }
  0xe7   :  { %v2237_v29 = vpop.f32.mrb[6].mxu1  ;;  %v267_v33 = vadd.f32 %v2026_v27, %v266_v28 }
  0xe8   :  { %v278_v31 = vadd.f32 %v2237_v29, %v2026_v27  ;;  %v269_v32 = vpop.f32.mrb[7].mxu1 }
  0xe9   :  { %v270_v34 = vadd.f32 %v2026_v27, %v269_v32 }
  0xea   :  { %v350_v35 = vpack.c.bf16 %v278_v31, %v275_v30 }
  0xeb   :  { %v349_v36 = vpack.c.bf16 %v270_v34, %v267_v33 }
  0xec   :  { %v362_v38 = vsel %vm351_vm1, %v350_v35, 0 }
  0xed   :  { %2409 = vmatprep.subr.msk.bf16.mxu1 %vm351_vm1, %v349_v36  ;;  %v359_v37 = vsel %vm351_vm1, %v349_v36, 0 }
  0xee   :  { %2245 = vmatpush3.bf16.xpose.msra.mxu1 %v359_v37 }
  0xef   :  { %2410 = vmatprep.subr.msk.bf16.mxu1 %vm351_vm1, %v350_v35 }
  0xf6   :  { %2247 = vmatpush3.bf16.xpose.msra.mxu1 %v362_v38 }
  0xf7   :  { %2412 = vmatprep.subr.msk.bf16.mxu1 %vm156_vm0, %v2445_v21 }
  0xfd   :  { %2249 = vmatmul.mubr.msk.bf16.vlgmr.msra.gmra.mrb[8].mxu1 %vm351_vm1, %v348_v24  ;;  %v2242_v24 = vpop.f32.mrb[0].mxu0 }
  0xfe   :  { %2268 = vmatprep.mubr.msk.bf16.mxu1 %vm156_vm0, %v2632_v1  ;;  %2267 = vmatpush3.bf16.xpose.msra.mxu1 %v615_v22  ;;  %v341_v25 = vadd.f32 %v2242_v24, %v2030_v23  ;;  %v332_v26 = vpop.f32.mrb[1].mxu0  ;;  %v547_v24 = vsel %vm156_vm0, %v2446_v54, 0 }
  0xff   :  { %v333_v27 = vadd.f32 %v2030_v23, %v332_v26  ;;  %v2243_v28 = vpop.f32.mrb[2].mxu0 }
 0x100   :  { %v344_v29 = vadd.f32 %v2243_v28, %v2030_v23  ;;  %v335_v30 = vpop.f32.mrb[3].mxu0 }
 0x101   :  { %v336_v31 = vadd.f32 %v2030_v23, %v335_v30 }
 0x102   :  { %v468_v32 = vpack.c.bf16 %v344_v29, %v341_v25  ;;  %v2447_v25 = vld [vmem:[%s3072_s5 + $0x10] sm:$0xff]  }
 0x103   :  { %v467_v33 = vpack.c.bf16 %v336_v31, %v333_v27 }
 0x105   :  { %2269 = vmatmul.mubr.msk.bf16.vlgmr.msra.gmra.mrb[12].mxu1 %vm156_vm0, %v2646_v4  ;;  %2252 = vmatprep.subr.bf16.mxu0 %v467_v33 }
 0x106   :  { %2253 = vmatpush3.bf16.msra.mxu0 %v467_v33  ;;  %v2041_v33 = vld [vmem:[%s3073_s6 + $0x1] ss:$0 sm:$0xff] }
 0x107   :  { %2254 = vmatprep.subr.bf16.mxu0 %v468_v32 }
 0x10a   :  { %2255 = vmatpush3.bf16.msra.mxu0 %v468_v32 }
 0x10b   :  { %2411 = vmatprep.subr.msk.bf16.mxu0 %vm156_vm0, %v2446_v54 }
 0x1d0   :  { %v2250_v58 = vpop.f32.mrb[8].mxu1 }
 0x1d1   :  { %v398_v62 = vpop.f32.mrb[9].mxu1  ;;  %v415_v0 = vmul.f32 0.14433756, %v2250_v58 }
 0x1d2   :  { %v413_v2 = vmul.f32 0.14433756, %v398_v62  ;;  %v2251_v3 = vpop.f32.mrb[10].mxu1 }
 0x1d3   :  { %v401_v6 = vpop.f32.mrb[11].mxu1  ;;  %v416_v12 = vmul.f32 0.14433756, %v2251_v3  ;;  %v419_v15 = vadd.f32 %v415_v0, %v2712_v11 }
 0x1d4   :  { %v414_v7 = vmul.f32 0.14433756, %v401_v6  ;;  %v417_v8 = vadd.f32 %v413_v2, %v2707_v5 }
 0x1d5   :  { %v427_v18 = vsel %vm156_vm0, %v419_v15, -inf  ;;  %v420_v19 = vadd.f32 %v416_v12, %v2718_v17 }
 0x1d6   :  { %v421_v13 = vsel %vm156_vm0, %v417_v8, -inf  ;;  %v418_v14 = vadd.f32 %v414_v7, %v2710_v10 }
 0x1d7   :  { %422 = vmax.xlane.f32.xlu0 %v421_v13  ;;  %v430_v20 = vsel %vm156_vm0, %v420_v19, -inf }
 0x1d8   :  { %v424_v16 = vsel %vm156_vm0, %v418_v14, -inf  ;;  %v2270_v56 = vpop.f32.mrb[12].mxu1 }
 0x1d9   :  { %425 = vmax.xlane.f32.xlu1 %v424_v16  ;;  %v660_v57 = vadd.f32 %v2270_v56, %v2048_v55  ;;  %v651_v58 = vpop.f32.mrb[13].mxu1 }
 0x1da   :  { %v652_v59 = vadd.f32 %v2048_v55, %v651_v58  ;;  %v2271_v60 = vpop.f32.mrb[14].mxu1 }
 0x1db   :  { %428 = vmax.xlane.f32.xlu0 %v427_v18  ;;  %v663_v61 = vadd.f32 %v2271_v60, %v2048_v55  ;;  %v654_v62 = vpop.f32.mrb[15].mxu1 }
 0x1dc   :  { %v655_v63 = vadd.f32 %v2048_v55, %v654_v62 }
 0x1dd   :  { %v737_v0 = vpack.c.bf16 %v663_v61, %v660_v57 }
 0x1de   :  { %v736_v2 = vpack.c.bf16 %v655_v63, %v652_v59  ;;  %v2078_v63 = vld [vmem:[%s3073_s6 + $0x2] ss:$0 sm:$0xff] }
 0x1df   :  { %431 = vmax.xlane.f32.xlu0 %v430_v20  ;;  %v748_v6 = vsel %vm351_vm1, %v737_v0, 0 }
 0x1e0   :  { %2414 = vmatprep.subr.msk.bf16.mxu1 %vm351_vm1, %v736_v2  ;;  %v745_v3 = vsel %vm351_vm1, %v736_v2, 0 }
 0x1e1   :  { %2279 = vmatpush3.bf16.xpose.msra.mxu1 %v745_v3 }
 0x1e2   :  { %2415 = vmatprep.subr.msk.bf16.mxu1 %vm351_vm1, %v737_v0 }
 0x1e9   :  { %2281 = vmatpush3.bf16.xpose.msra.mxu1 %v748_v6 }
 0x1ea   :  { %2420 = vmatprep.subr.msk.bf16.mxu1 %vm156_vm0, %v2447_v25 }
 0x264   :  { %v423_v34 = vpop.xlane.xlu0 %422 }
 0x265   :  { %v433_v35 = vsub.f32 %v417_v8, %v423_v34 }
 0x266   :  { %v426_v36 = vpop.xlane.xlu1 %425 }
 0x267   :  { %v437_v37 = vmul.f32 1.442695, %v433_v35  ;;  %v434_v38 = vsub.f32 %v418_v14, %v426_v36 }
 0x268   :  { %v429_v39 = vpop.xlane.xlu0 %428 }
 0x269   :  { %2462 = vpow2.f32 %v437_v37  ;;  %v439_v40 = vmul.f32 1.442695, %v434_v38  ;;  %v435_v41 = vsub.f32 %v419_v15, %v429_v39 }
 0x26b   :  { %2464 = vpow2.f32 %v439_v40  ;;  %v441_v42 = vmul.f32 1.442695, %v435_v41 }
 0x26c   :  { %v432_v43 = vpop.xlane.xlu0 %431 }
 0x26d   :  { %2466 = vpow2.f32 %v441_v42  ;;  %v436_v44 = vsub.f32 %v420_v19, %v432_v43  ;;  %v1076_v43 = vsel %vm156_vm0, %v2447_v25, 0 }
 0x26f   :  { %v443_v45 = vmul.f32 1.442695, %v436_v44  ;;  %v2448_v44 = vld [vmem:[%s3074_s7 + $0x10] sm:$0xff]  }
 0x271   :  { %2468 = vpow2.f32 %v443_v45  ;;  %v1144_v45 = vsel %vm156_vm0, %v2448_v44, 0 }
 0x273   :  { %v2463_v46 = vpop.eup %2462 }
 0x274   :  { %v445_v47 = vsel %vm156_vm0, %v2463_v46, 0.0 }
 0x275   :  { %v2465_v48 = vpop.eup %2464  ;;  %446 = vadd.xlane.f32.xlu1 %v445_v47 }
 0x276   :  { %v448_v49 = vsel %vm156_vm0, %v2465_v48, 0.0 }
 0x277   :  { %v2467_v50 = vpop.eup %2466  ;;  %449 = vadd.xlane.f32.xlu0 %v448_v49 }
 0x278   :  { %v451_v51 = vsel %vm156_vm0, %v2467_v50, 0.0 }
 0x279   :  { %452 = vadd.xlane.f32.xlu1 %v451_v51 }
 0x27b   :  { %v2469_v52 = vpop.eup %2468 }
 0x27c   :  { %v454_v53 = vsel %vm156_vm0, %v2469_v52, 0.0 }
 0x27d   :  { %455 = vadd.xlane.f32.xlu0 %v454_v53 }
 0x302   :  { %v447_v7 = vpop.xlane.xlu1 %446 }
 0x303   :  { %2470 = vrcp.f32 %v447_v7 }
 0x304   :  { %v450_v8 = vpop.xlane.xlu0 %449 }
 0x305   :  { %2472 = vrcp.f32 %v450_v8 }
 0x306   :  { %v453_v9 = vpop.xlane.xlu1 %452 }
 0x307   :  { %2474 = vrcp.f32 %v453_v9 }
 0x30a   :  { %v456_v12 = vpop.xlane.xlu0 %455 }
 0x30b   :  { %2476 = vrcp.f32 %v456_v12 }
 0x30d   :  { %v2471_v13 = vpop.eup %2470 }
 0x30e   :  { %v458_v15 = vmul.f32 %v2471_v13, %v2463_v46  ;;  %v2449_v46 = vld [vmem:[%s3076_s9 + $0x10] sm:$0xff]  }
 0x30f   :  { %v2473_v14 = vpop.eup %2472  ;;  %v1212_v47 = vsel %vm156_vm0, %v2449_v46, 0 }
 0x310   :  { %v460_v16 = vmul.f32 %v2473_v14, %v2465_v48  ;;  %v2452_v48 = vld [vmem:[%s3076_s9 + $0x8] sm:$0xff]  }
 0x311   :  { %v2475_v19 = vpop.eup %2474  ;;  %v683_v49 = vsel %vm156_vm0, %v2452_v48, 0 }
 0x312   :  { %v465_v18 = vpack.c.bf16 %v460_v16, %v458_v15  ;;  %v462_v21 = vmul.f32 %v2475_v19, %v2467_v50 }
 0x314   :  { %2256 = vmatprep.mubr.msk.bf16.mxu0 %vm156_vm0, %v465_v18 }
 0x315   :  { %v2477_v20 = vpop.eup %2476 }
 0x316   :  { %v464_v22 = vmul.f32 %v2477_v20, %v2469_v52  ;;  %v2085_v20 = vld [vmem:[%s3075_s8 + $0x2] ss:$0 sm:$0xff] }
 0x318   :  { %v466_v23 = vpack.c.bf16 %v464_v22, %v462_v21 }
 0x31a   :  { %2257 = vmatmul.mubr.msk.bf16.vlgmr.msra.gmra.mrb[4].mxu0 %vm156_vm0, %v466_v23 }
 0x31b   :  { %2261 = vmatpush3.bf16.xpose.msra.mxu0 %v547_v24  ;;  %2262 = vmatprep.mubr.msk.bf16.mxu0 %vm156_vm0, %v2632_v1 }
 0x31c   :  { %2413 = vmatprep.subr.msk.bf16.mxu0 %vm156_vm0, %v2452_v48 }
 0x322   :  { %2263 = vmatmul.mubr.msk.bf16.vlgmr.msra.gmra.mrb[8].mxu0 %vm156_vm0, %v2646_v4 }
 0x323   :  { %2274 = vmatprep.mubr.msk.bf16.mxu0 %vm156_vm0, %v2632_v1  ;;  %2273 = vmatpush3.bf16.xpose.msra.mxu0 %v683_v49 }
 0x32a   :  { %2275 = vmatmul.mubr.msk.bf16.vlgmr.msra.gmra.mrb[12].mxu0 %vm156_vm0, %v2646_v4 }
 0x3ed   :  { %v2761_v26 = vpop.f32.mrb[4].mxu0 }
 0x3ee   :  { %v2763_v27 = vpop.f32.mrb[5].mxu0 }
 0x3ef   :  { %v2765_v28 = vpop.f32.mrb[6].mxu0 }
 0x3f0   :  { %v525_v29 = vpack.c.bf16 %v2765_v28, %v2761_v26  ;;  %v2769_v30 = vpop.f32.mrb[7].mxu0 }
 0x3f1   :  { %v524_v31 = vpack.c.bf16 %v2769_v30, %v2763_v27  ;;  %v2457_v30 = vld [vmem:[%s3078_s11 + $0x20] sm:$0xff]  }
 0x3f5   :  { %v2264_v32 = vpop.f32.mrb[8].mxu0 }
 0x3f6   :  { %v583_v34 = vpop.f32.mrb[9].mxu0  ;;  %v592_v36 = vadd.f32 %v2264_v32, %v2041_v33 }
 0x3f7   :  { %v2265_v35 = vpop.f32.mrb[10].mxu0  ;;  %v584_v39 = vadd.f32 %v2041_v33, %v583_v34 }
 0x3f8   :  { %v595_v37 = vadd.f32 %v2265_v35, %v2041_v33  ;;  %v586_v38 = vpop.f32.mrb[11].mxu0 }
 0x3f9   :  { %v587_v40 = vadd.f32 %v2041_v33, %v586_v38 }
 0x3fa   :  { %v735_v41 = vpack.c.bf16 %v595_v37, %v592_v36  ;;  %v2450_v37 = vld [vmem:[%s3072_s5 + $0x18] sm:$0xff]  }
 0x3fb   :  { %v734_v42 = vpack.c.bf16 %v587_v40, %v584_v39  ;;  %v1538_v39 = vsel %vm156_vm0, %v2450_v37, 0  ;;  %v2451_v40 = vld [vmem:[%s3074_s7 + $0x18] sm:$0xff]  }
 0x3fd   :  { %2282 = vmatprep.mubr.msk.bf16.mxu1 %vm351_vm1, %v734_v42  ;;  %v2092_v42 = vld [vmem:[%s3077_s10 + $0x2] ss:$0 sm:$0xff] }
 0x3fe   :  { %2283 = vmatmul.mubr.msk.bf16.vlgmr.msra.gmra.mrb[16].mxu1 %vm351_vm1, %v735_v41  ;;  %v1606_v41 = vsel %vm156_vm0, %v2451_v40, 0 }
 0x3ff   :  { %2311 = vmatpush3.bf16.xpose.msra.mxu1 %v1076_v43  ;;  %2312 = vmatprep.mubr.msk.bf16.mxu1 %vm156_vm0, %v2632_v1 }
 0x400   :  { %2421 = vmatprep.subr.msk.bf16.mxu1 %vm156_vm0, %v2448_v44 }
 0x406   :  { %2313 = vmatmul.mubr.msk.bf16.vlgmr.msra.gmra.mrb[20].mxu1 %vm156_vm0, %v2646_v4 }
 0x407   :  { %2317 = vmatpush3.bf16.xpose.msra.mxu1 %v1144_v45  ;;  %2318 = vmatprep.mubr.msk.bf16.mxu1 %vm156_vm0, %v2632_v1 }
 0x408   :  { %2422 = vmatprep.subr.msk.bf16.mxu1 %vm156_vm0, %v2449_v46 }
 0x40e   :  { %2319 = vmatmul.mubr.msk.bf16.vlgmr.msra.gmra.mrb[24].mxu1 %vm156_vm0, %v2646_v4 }
 0x40f   :  { %2324 = vmatprep.mubr.msk.bf16.mxu1 %vm156_vm0, %v2632_v1  ;;  %2323 = vmatpush3.bf16.xpose.msra.mxu1 %v1212_v47 }
 0x416   :  { %2325 = vmatmul.mubr.msk.bf16.vlgmr.msra.gmra.mrb[28].mxu1 %vm156_vm0, %v2646_v4 }
 0x4d1   :  { %v2284_v50 = vpop.f32.mrb[16].mxu1 }
 0x4d2   :  { %v784_v51 = vpop.f32.mrb[17].mxu1  ;;  %v801_v52 = vmul.f32 0.14433756, %v2284_v50 }
 0x4d3   :  { %v799_v53 = vmul.f32 0.14433756, %v784_v51  ;;  %v2285_v54 = vpop.f32.mrb[18].mxu1 }
 0x4d4   :  { %v787_v55 = vpop.f32.mrb[19].mxu1  ;;  %v802_v56 = vmul.f32 0.14433756, %v2285_v54  ;;  %v2817_v61 = vadd.f32 %v801_v52, %v2712_v11 }
 0x4d5   :  { %v800_v57 = vmul.f32 0.14433756, %v787_v55  ;;  %v2809_v58 = vadd.f32 %v799_v53, %v2707_v5 }
 0x4d6   :  { %v2825_v2 = vadd.f32 %v802_v56, %v2718_v17  ;;  %v813_v7 = vsel %vm156_vm0, %v2817_v61, -inf }
 0x4d7   :  { %v807_v59 = vsel %vm156_vm0, %v2809_v58, -inf  ;;  %v2814_v60 = vadd.f32 %v800_v57, %v2710_v10 }
 0x4d8   :  { %808 = vmax.xlane.f32.xlu1 %v807_v59  ;;  %v816_v15 = vsel %vm156_vm0, %v2825_v2, -inf }
 0x4d9   :  { %v2314_v62 = vpop.f32.mrb[20].mxu1  ;;  %v810_v0 = vsel %vm156_vm0, %v2814_v60, -inf }
 0x4da   :  { %v1112_v3 = vpop.f32.mrb[21].mxu1  ;;  %811 = vmax.xlane.f32.xlu0 %v810_v0  ;;  %v1121_v8 = vadd.f32 %v2314_v62, %v2078_v63 }
 0x4db   :  { %v2315_v6 = vpop.f32.mrb[22].mxu1  ;;  %v1113_v13 = vadd.f32 %v2078_v63, %v1112_v3 }
 0x4dc   :  { %v1124_v9 = vadd.f32 %v2315_v6, %v2078_v63  ;;  %814 = vmax.xlane.f32.xlu1 %v813_v7  ;;  %v1115_v12 = vpop.f32.mrb[23].mxu1 }
 0x4dd   :  { %v1116_v14 = vadd.f32 %v2078_v63, %v1115_v12  ;;  %v2276_v12 = vpop.f32.mrb[12].mxu0 }
 0x4de   :  { %v1264_v16 = vpack.c.bf16 %v1124_v9, %v1121_v8  ;;  %817 = vmax.xlane.f32.xlu0 %v816_v15  ;;  %v2055_v15 = vld [vmem:[%s3077_s10 + $0x1] ss:$0 sm:$0xff] }
 0x4df   :  { %v1263_v18 = vpack.c.bf16 %v1116_v14, %v1113_v13  ;;  %v719_v13 = vpop.f32.mrb[13].mxu0 }
 0x4e0   :  { %v2277_v14 = vpop.f32.mrb[14].mxu0 }
 0x4e1   :  { %v2320_v19 = vpop.f32.mrb[24].mxu1  ;;  %2332 = vmatprep.mubr.msk.bf16.mxu1 %vm351_vm1, %v1263_v18  ;;  %v720_v18 = vadd.f32 %v2055_v15, %v719_v13 }
 0x4e2   :  { %v1180_v21 = vpop.f32.mrb[25].mxu1  ;;  %v1189_v23 = vadd.f32 %v2320_v19, %v2085_v20 }
 0x4e3   :  { %v2321_v22 = vpop.f32.mrb[26].mxu1  ;;  %v1181_v32 = vadd.f32 %v2085_v20, %v1180_v21  ;;  %v728_v21 = vadd.f32 %v2276_v12, %v2055_v15 }
 0x4e4   :  { %v1192_v24 = vadd.f32 %v2321_v22, %v2085_v20  ;;  %v1183_v25 = vpop.f32.mrb[27].mxu1  ;;  %v731_v22 = vadd.f32 %v2277_v14, %v2055_v15 }
 0x4e5   :  { %v1184_v33 = vadd.f32 %v2085_v20, %v1183_v25 }
 0x4e6   :  { %v1266_v34 = vpack.c.bf16 %v1192_v24, %v1189_v23  ;;  %v854_v23 = vpack.c.bf16 %v731_v22, %v728_v21 }
 0x4e7   :  { %v1265_v35 = vpack.c.bf16 %v1184_v33, %v1181_v32 }
 0x4e8   :  { %v1277_v38 = vsel %vm351_vm1, %v1266_v34, 0 }
 0x4e9   :  { %2423 = vmatprep.subr.msk.bf16.mxu1 %vm351_vm1, %v1265_v35  ;;  %v1274_v36 = vsel %vm351_vm1, %v1265_v35, 0  ;;  %v2326_v43 = vpop.f32.mrb[28].mxu1 }
 0x4ea   :  { %2329 = vmatpush3.bf16.xpose.msra.mxu1 %v1274_v36  ;;  %v1257_v44 = vadd.f32 %v2326_v43, %v2092_v42  ;;  %v1248_v45 = vpop.f32.mrb[29].mxu1 }
 0x4eb   :  { %2424 = vmatprep.subr.msk.bf16.mxu1 %vm351_vm1, %v1266_v34  ;;  %v1249_v46 = vadd.f32 %v2092_v42, %v1248_v45  ;;  %v2327_v47 = vpop.f32.mrb[30].mxu1 }
 0x4ec   :  { %v1260_v48 = vadd.f32 %v2327_v47, %v2092_v42  ;;  %v1251_v49 = vpop.f32.mrb[31].mxu1 }
 0x4ed   :  { %v1252_v50 = vadd.f32 %v2092_v42, %v1251_v49  ;;  %v2111_v42 = vld [vmem:[%s3073_s6 + $0x3] ss:$0 sm:$0xff] }
 0x4ee   :  { %v2861_v51 = vpack.c.bf16 %v1260_v48, %v1257_v44 }
 0x4ef   :  { %v2863_v52 = vpack.c.bf16 %v1252_v50, %v1249_v46 }
 0x4f2   :  { %2331 = vmatpush3.bf16.xpose.msra.mxu1 %v1277_v38 }
 0x4f3   :  { %2427 = vmatprep.subr.msk.bf16.mxu1 %vm156_vm0, %v2450_v37 }
 0x4f9   :  { %2333 = vmatmul.mubr.msk.bf16.vlgmr.msra.gmra.mrb[32].mxu1 %vm351_vm1, %v1264_v16  ;;  %v722_v16 = vpop.f32.mrb[15].mxu0 }
 0x4fa   :  { %2353 = vmatpush3.bf16.xpose.msra.mxu1 %v1538_v39  ;;  %2354 = vmatprep.mubr.msk.bf16.mxu1 %vm156_vm0, %v2632_v1  ;;  %v723_v19 = vadd.f32 %v2055_v15, %v722_v16 }
 0x4fb   :  { %2428 = vmatprep.subr.msk.bf16.mxu1 %vm156_vm0, %v2451_v40 }
 0x4fc   :  { %v853_v20 = vpack.c.bf16 %v723_v19, %v720_v18 }
 0x4fe   :  { %2286 = vmatprep.subr.bf16.mxu0 %v853_v20 }
 0x4ff   :  { %2287 = vmatpush3.bf16.msra.mxu0 %v853_v20 }
 0x500   :  { %2288 = vmatprep.subr.bf16.mxu0 %v854_v23 }
 0x501   :  { %2355 = vmatmul.mubr.msk.bf16.vlgmr.msra.gmra.mrb[36].mxu1 %vm156_vm0, %v2646_v4 }
 0x502   :  { %2359 = vmatpush3.bf16.xpose.msra.mxu1 %v1606_v41  ;;  %2360 = vmatprep.mubr.msk.bf16.mxu1 %vm156_vm0, %v2632_v1 }
 0x503   :  { %2289 = vmatpush3.bf16.msra.mxu0 %v854_v23 }
 0x509   :  { %2361 = vmatmul.mubr.msk.bf16.vlgmr.msra.gmra.mrb[40].mxu1 %vm156_vm0, %v2646_v4 }
 0x565   :  { %v809_v1 = vpop.xlane.xlu1 %808 }
 0x566   :  { %v819_v53 = vsub.f32 %v2809_v58, %v809_v1 }
 0x567   :  { %v812_v4 = vpop.xlane.xlu0 %811 }
 0x568   :  { %v823_v54 = vmul.f32 1.442695, %v819_v53  ;;  %v820_v55 = vsub.f32 %v2814_v60, %v812_v4 }
 0x569   :  { %v815_v56 = vpop.xlane.xlu1 %814 }
 0x56a   :  { %2478 = vpow2.f32 %v823_v54  ;;  %v825_v57 = vmul.f32 1.442695, %v820_v55  ;;  %v821_v59 = vsub.f32 %v2817_v61, %v815_v56 }
 0x56b   :  { %v818_v62 = vpop.xlane.xlu0 %817 }
 0x56c   :  { %2480 = vpow2.f32 %v825_v57  ;;  %v827_v63 = vmul.f32 1.442695, %v821_v59  ;;  %v822_v0 = vsub.f32 %v2825_v2, %v818_v62  ;;  %v2118_v57 = vld [vmem:[%s3075_s8 + $0x3] ss:$0 sm:$0xff] }
 0x56e   :  { %2482 = vpow2.f32 %v827_v63  ;;  %v829_v3 = vmul.f32 1.442695, %v822_v0 }
 0x570   :  { %2484 = vpow2.f32 %v829_v3 }
 0x574   :  { %v2869_v6 = vpop.eup %2478 }
 0x575   :  { %v831_v58 = vsel %vm156_vm0, %v2869_v6, 0.0 }
 0x576   :  { %v2873_v7 = vpop.eup %2480  ;;  %832 = vadd.xlane.f32.xlu1 %v831_v58 }
 0x577   :  { %v834_v60 = vsel %vm156_vm0, %v2873_v7, 0.0 }
 0x578   :  { %v2877_v61 = vpop.eup %2482  ;;  %835 = vadd.xlane.f32.xlu0 %v834_v60 }
 0x579   :  { %v837_v2 = vsel %vm156_vm0, %v2877_v61, 0.0 }
 0x57a   :  { %v2881_v8 = vpop.eup %2484  ;;  %838 = vadd.xlane.f32.xlu1 %v837_v2 }
 0x57b   :  { %v840_v9 = vsel %vm156_vm0, %v2881_v8, 0.0 }
 0x57c   :  { %841 = vadd.xlane.f32.xlu0 %v840_v9 }
 0x5cc   :  { %v2334_v24 = vpop.f32.mrb[32].mxu1 }
 0x5cd   :  { %v1313_v25 = vpop.f32.mrb[33].mxu1  ;;  %v1330_v32 = vmul.f32 0.14433756, %v2334_v24 }
 0x5ce   :  { %v1328_v33 = vmul.f32 0.14433756, %v1313_v25  ;;  %v2335_v34 = vpop.f32.mrb[34].mxu1 }
 0x5cf   :  { %v1316_v35 = vpop.f32.mrb[35].mxu1  ;;  %v1331_v36 = vmul.f32 0.14433756, %v2335_v34  ;;  %v2897_v41 = vadd.f32 %v1330_v32, %v2712_v11 }
 0x5d0   :  { %v1329_v37 = vmul.f32 0.14433756, %v1316_v35  ;;  %v2889_v38 = vadd.f32 %v1328_v33, %v2707_v5 }
 0x5d1   :  { %v2905_v45 = vadd.f32 %v1331_v36, %v2718_v17  ;;  %v1342_v48 = vsel %vm156_vm0, %v2897_v41, -inf  ;;  %v2453_v36 = vld [vmem:[%s3078_s11 + $0x10] sm:$0xff]  }
 0x5d2   :  { %v1336_v39 = vsel %vm156_vm0, %v2889_v38, -inf  ;;  %v2894_v40 = vadd.f32 %v1329_v37, %v2710_v10  ;;  %2416 = vmatprep.subr.msk.bf16.mxu0 %vm351_vm1, %v2453_v36 }
 0x5d3   :  { %1337 = vmax.xlane.f32.xlu1 %v1336_v39  ;;  %v1345_v4 = vsel %vm156_vm0, %v2905_v45, -inf }
 0x5d4   :  { %v1339_v43 = vsel %vm156_vm0, %v2894_v40, -inf  ;;  %v2356_v44 = vpop.f32.mrb[36].mxu1 }
 0x5d5   :  { %1340 = vmax.xlane.f32.xlu0 %v1339_v43  ;;  %v1583_v46 = vadd.f32 %v2356_v44, %v2111_v42  ;;  %v1574_v47 = vpop.f32.mrb[37].mxu1 }
 0x5d6   :  { %v1575_v49 = vadd.f32 %v2111_v42, %v1574_v47  ;;  %v2357_v50 = vpop.f32.mrb[38].mxu1 }
 0x5d7   :  { %1343 = vmax.xlane.f32.xlu1 %v1342_v48  ;;  %v1586_v1 = vadd.f32 %v2357_v50, %v2111_v42  ;;  %v1577_v53 = vpop.f32.mrb[39].mxu1 }
 0x5d8   :  { %v1578_v54 = vadd.f32 %v2111_v42, %v1577_v53 }
 0x5d9   :  { %1346 = vmax.xlane.f32.xlu0 %v1345_v4  ;;  %v1726_v55 = vpack.c.bf16 %v1586_v1, %v1583_v46 }
 0x5da   :  { %v1725_v56 = vpack.c.bf16 %v1578_v54, %v1575_v49 }
 0x5dc   :  { %v2362_v59 = vpop.f32.mrb[40].mxu1  ;;  %2374 = vmatprep.mubr.msk.bf16.mxu1 %vm351_vm1, %v1725_v56 }
 0x5dd   :  { %v1651_v62 = vadd.f32 %v2362_v59, %v2118_v57  ;;  %v1642_v63 = vpop.f32.mrb[41].mxu1 }
 0x5de   :  { %v1643_v0 = vadd.f32 %v2118_v57, %v1642_v63  ;;  %v2363_v3 = vpop.f32.mrb[42].mxu1 }
 0x5df   :  { %v1654_v58 = vadd.f32 %v2363_v3, %v2118_v57  ;;  %v1645_v60 = vpop.f32.mrb[43].mxu1 }
 0x5e0   :  { %v1646_v2 = vadd.f32 %v2118_v57, %v1645_v60 }
 0x5e1   :  { %v1728_v9 = vpack.c.bf16 %v1654_v58, %v1651_v62 }
 0x5e2   :  { %v1727_v12 = vpack.c.bf16 %v1646_v2, %v1643_v0 }
 0x5e3   :  { %v1739_v14 = vsel %vm351_vm1, %v1728_v9, 0 }
 0x5e4   :  { %2430 = vmatprep.subr.msk.bf16.mxu1 %vm351_vm1, %v1727_v12  ;;  %v1736_v13 = vsel %vm351_vm1, %v1727_v12, 0 }
 0x5e5   :  { %2371 = vmatpush3.bf16.xpose.msra.mxu1 %v1736_v13 }
 0x5e6   :  { %2431 = vmatprep.subr.msk.bf16.mxu1 %vm351_vm1, %v1728_v9 }
 0x5ed   :  { %2373 = vmatpush3.bf16.xpose.msra.mxu1 %v1739_v14 }
 0x5f4   :  { %2375 = vmatmul.mubr.msk.bf16.vlgmr.msra.gmra.mrb[44].mxu1 %vm351_vm1, %v1726_v55 }
 0x603   :  { %v833_v15 = vpop.xlane.xlu1 %832 }
 0x604   :  { %2486 = vrcp.f32 %v833_v15 }
 0x605   :  { %v836_v16 = vpop.xlane.xlu0 %835 }
 0x606   :  { %2488 = vrcp.f32 %v836_v16 }
 0x607   :  { %v839_v18 = vpop.xlane.xlu1 %838 }
 0x608   :  { %2490 = vrcp.f32 %v839_v18 }
 0x609   :  { %v842_v19 = vpop.xlane.xlu0 %841 }
 0x60a   :  { %2492 = vrcp.f32 %v842_v19 }
 0x60e   :  { %v2487_v20 = vpop.eup %2486 }
 0x60f   :  { %v844_v22 = vmul.f32 %v2487_v20, %v2869_v6  ;;  %v2454_v6 = vld [vmem:[%s3078_s11 + $0x18] sm:$0xff]  }
 0x610   :  { %v2489_v21 = vpop.eup %2488 }
 0x611   :  { %v846_v23 = vmul.f32 %v2489_v21, %v2873_v7  ;;  %v934_v7 = vsel %vm351_vm1, %v2453_v36, 0 }
 0x612   :  { %v2491_v24 = vpop.eup %2490 }
 0x613   :  { %v851_v25 = vpack.c.bf16 %v846_v23, %v844_v22  ;;  %v848_v33 = vmul.f32 %v2491_v24, %v2877_v61  ;;  %v937_v61 = vsel %vm351_vm1, %v2454_v6, 0 }
 0x614   :  { %v2493_v32 = vpop.eup %2492 }
 0x615   :  { %v850_v34 = vmul.f32 %v2493_v32, %v2881_v8  ;;  %2290 = vmatprep.mubr.msk.bf16.mxu0 %vm156_vm0, %v851_v25 }
 0x617   :  { %v852_v35 = vpack.c.bf16 %v850_v34, %v848_v33 }
 0x619   :  { %2291 = vmatmul.mubr.msk.bf16.vlgmr.msra.gmra.mrb[16].mxu0 %vm156_vm0, %v852_v35 }
 0x61a   :  { %2295 = vmatpush3.bf16.xpose.msra.mxu0 %v934_v7  ;;  %v1463_v7 = vsel %vm351_vm1, %v2457_v30, 0 }
 0x61b   :  { %2417 = vmatprep.subr.msk.bf16.mxu0 %vm351_vm1, %v2454_v6 }
 0x622   :  { %2297 = vmatpush3.bf16.xpose.msra.mxu0 %v937_v61 }
 0x660   :  { %v1338_v8 = vpop.xlane.xlu1 %1337 }
 0x661   :  { %v1348_v37 = vsub.f32 %v2889_v38, %v1338_v8 }
 0x662   :  { %v1341_v39 = vpop.xlane.xlu0 %1340 }
 0x663   :  { %v1352_v42 = vmul.f32 1.442695, %v1348_v37  ;;  %v1349_v43 = vsub.f32 %v2894_v40, %v1341_v39  ;;  %v2455_v40 = vld [vmem:[%s3078_s11] sm:$0xff]  }
 0x664   :  { %v1344_v44 = vpop.xlane.xlu1 %1343  ;;  %2418 = vmatprep.subr.msk.bf16.mxu0 %vm351_vm1, %v2455_v40  ;;  %v1005_v22 = vsel %vm351_vm1, %v2455_v40, 0 }
 0x665   :  { %2494 = vpow2.f32 %v1352_v42  ;;  %v1354_v46 = vmul.f32 1.442695, %v1349_v43  ;;  %v1350_v47 = vsub.f32 %v2897_v41, %v1344_v44 }
 0x666   :  { %v1347_v48 = vpop.xlane.xlu0 %1346 }
 0x667   :  { %2496 = vpow2.f32 %v1354_v46  ;;  %v1356_v49 = vmul.f32 1.442695, %v1350_v47  ;;  %v1351_v50 = vsub.f32 %v2905_v45, %v1347_v48 }
 0x669   :  { %2498 = vpow2.f32 %v1356_v49  ;;  %v1358_v1 = vmul.f32 1.442695, %v1351_v50 }
 0x66b   :  { %2500 = vpow2.f32 %v1358_v1 }
 0x66f   :  { %v2940_v53 = vpop.eup %2494 }
 0x670   :  { %v1360_v38 = vsel %vm156_vm0, %v2940_v53, 0.0 }
 0x671   :  { %v2947_v4 = vpop.eup %2496  ;;  %1361 = vadd.xlane.f32.xlu1 %v1360_v38 }
 0x672   :  { %v1363_v41 = vsel %vm156_vm0, %v2947_v4, 0.0 }
 0x673   :  { %v2952_v45 = vpop.eup %2498  ;;  %1364 = vadd.xlane.f32.xlu0 %v1363_v41  ;;  %v2459_v41 = vld [vmem:[%s3076_s9 + $0x18] sm:$0xff]  }
 0x674   :  { %v1366_v54 = vsel %vm156_vm0, %v2952_v45, 0.0 }
 0x675   :  { %v2501_v55 = vpop.eup %2500  ;;  %1367 = vadd.xlane.f32.xlu1 %v1366_v54 }
 0x676   :  { %v1369_v56 = vsel %vm156_vm0, %v2501_v55, 0.0 }
 0x677   :  { %1370 = vadd.xlane.f32.xlu0 %v1369_v56 }
 0x6c7   :  { %v2376_v57 = vpop.f32.mrb[44].mxu1 }
 0x6c8   :  { %v1775_v59 = vpop.f32.mrb[45].mxu1  ;;  %v1792_v62 = vmul.f32 0.14433756, %v2376_v57 }
 0x6c9   :  { %v1790_v63 = vmul.f32 0.14433756, %v1775_v59  ;;  %v2377_v0 = vpop.f32.mrb[46].mxu1 }
 0x6ca   :  { %v1778_v3 = vpop.f32.mrb[47].mxu1  ;;  %v1793_v58 = vmul.f32 0.14433756, %v2377_v0  ;;  %v2963_v13 = vadd.f32 %v1792_v62, %v2712_v11 }
 0x6cb   :  { %v1791_v60 = vmul.f32 0.14433756, %v1778_v3  ;;  %v1794_v2 = vadd.f32 %v1790_v63, %v2707_v5 }
 0x6cc   :  { %v2968_v15 = vadd.f32 %v1793_v58, %v2718_v17  ;;  %v1804_v16 = vsel %vm156_vm0, %v2963_v13, -inf  ;;  %v2456_v17 = vld [vmem:[%s3078_s11 + $0x8] sm:$0xff]   ;;  %v1674_v58 = vsel %vm156_vm0, %v2459_v41, 0 }
 0x6cd   :  { %v2959_v9 = vadd.f32 %v1791_v60, %v2710_v10  ;;  %v1798_v12 = vsel %vm156_vm0, %v1794_v2, -inf  ;;  %v1008_v23 = vsel %vm351_vm1, %v2456_v17, 0  ;;  %v2526_v60 = vld [vmem:[%s3067_s0] sm:$0xff]  }
 0x6ce   :  { %1799 = vmax.xlane.f32.xlu1 %v1798_v12  ;;  %v1807_v5 = vsel %vm156_vm0, %v2968_v15, -inf }
 0x6cf   :  { %v1801_v14 = vsel %vm156_vm0, %v2959_v9, -inf }
 0x6d0   :  { %1802 = vmax.xlane.f32.xlu0 %v1801_v14 }
 0x6d2   :  { %1805 = vmax.xlane.f32.xlu1 %v1804_v16 }
 0x6d4   :  { %1808 = vmax.xlane.f32.xlu0 %v1807_v5 }
 0x6ec   :  { %v2292_v10 = vpop.f32.mrb[16].mxu0 }
 0x6ed   :  { %v895_v18 = vpop.f32.mrb[17].mxu0 }
 0x6ee   :  { %v2293_v11 = vpop.f32.mrb[18].mxu0 }
 0x6ef   :  { %v911_v19 = vpack.c.bf16 %v2293_v11, %v2292_v10  ;;  %v898_v20 = vpop.f32.mrb[19].mxu0 }
 0x6f0   :  { %v910_v21 = vpack.c.bf16 %v898_v20, %v895_v18 }
 0x6f2   :  { %2298 = vmatprep.mubr.msk.bf16.mxu0 %vm351_vm1, %v910_v21 }
 0x6f3   :  { %2299 = vmatmul.mubr.msk.bf16.vlgmr.msra.gmra.mrb[20].mxu0 %vm351_vm1, %v911_v19  ;;  %v2125_v19 = vld [vmem:[%s3077_s10 + $0x3] ss:$0 sm:$0xff] }
 0x6f4   :  { %2303 = vmatpush3.bf16.xpose.msra.mxu0 %v1005_v22  ;;  %2306 = vmatprep.mubr.msk.bf16.mxu0 %vm351_vm1, %v524_v31 }
 0x6f5   :  { %2419 = vmatprep.subr.msk.bf16.mxu0 %vm351_vm1, %v2456_v17 }
 0x6fc   :  { %2305 = vmatpush3.bf16.xpose.msra.mxu0 %v1008_v23 }
 0x6fd   :  { %2336 = vmatprep.subr.bf16.mxu0 %v2863_v52 }
 0x6fe   :  { %v1362_v24 = vpop.xlane.xlu1 %1361 }
 0x6ff   :  { %2502 = vrcp.f32 %v1362_v24 }
 0x700   :  { %v1365_v25 = vpop.xlane.xlu0 %1364 }
 0x701   :  { %2504 = vrcp.f32 %v1365_v25 }
 0x702   :  { %v1368_v32 = vpop.xlane.xlu1 %1367 }
 0x703   :  { %2506 = vrcp.f32 %v1368_v32  ;;  %2307 = vmatmul.mubr.msk.bf16.vlgmr.msra.gmra.mrb[20].mxu0 %vm351_vm1, %v525_v29 }
 0x704   :  { %2337 = vmatpush3.bf16.msra.mxu0 %v2863_v52  ;;  %v1371_v27 = vpop.xlane.xlu0 %1370 }
 0x705   :  { %2508 = vrcp.f32 %v1371_v27  ;;  %2338 = vmatprep.subr.bf16.mxu0 %v2861_v51 }
 0x708   :  { %2339 = vmatpush3.bf16.msra.mxu0 %v2861_v51  ;;  %v2458_v51 = vld [vmem:[%s3078_s11 + $0x28] sm:$0xff]  }
 0x709   :  { %v2503_v31 = vpop.eup %2502  ;;  %2425 = vmatprep.subr.msk.bf16.mxu0 %vm351_vm1, %v2457_v30  ;;  %v1466_v1 = vsel %vm351_vm1, %v2458_v51, 0 }
 0x70a   :  { %v1373_v26 = vmul.f32 %v2503_v31, %v2940_v53 }
 0x70b   :  { %v2505_v33 = vpop.eup %2504 }
 0x70c   :  { %v1375_v28 = vmul.f32 %v2505_v33, %v2947_v4 }
 0x70d   :  { %v2507_v29 = vpop.eup %2506 }
 0x70e   :  { %v1380_v52 = vpack.c.bf16 %v1375_v28, %v1373_v26  ;;  %v1377_v35 = vmul.f32 %v2507_v29, %v2952_v45  ;;  %v2460_v26 = vld [vmem:[%s3078_s11 + $0x30] sm:$0xff]  }
 0x70f   :  { %v2509_v34 = vpop.eup %2508 }
 0x710   :  { %v1379_v36 = vmul.f32 %v2509_v34, %v2501_v55  ;;  %2340 = vmatprep.mubr.msk.bf16.mxu0 %vm156_vm0, %v1380_v52  ;;  %v1925_v52 = vsel %vm351_vm1, %v2460_v26, 0  ;;  %v2461_v34 = vld [vmem:[%s3078_s11 + $0x38] sm:$0xff]   ;;  %s2553_s11 = smov [#allocation2]  }
 0x711   :  { %s2003_s6 = sshll.u32 %s2553_s11, 4  ;;  %s2004_s6 = int_to_ptr.vmem [resolvable:$true] %s2003_s6 }
 0x712   :  { %v1381_v6 = vpack.c.bf16 %v1379_v36, %v1377_v35  ;;  %v1928_v35 = vsel %vm351_vm1, %v2461_v34, 0  ;;  %p2533_p1 = scmp.lt.s32.totalorder %s2004_s6, %s2004_s6 }
 0x714   :  { %2341 = vmatmul.mubr.msk.bf16.vlgmr.msra.gmra.mrb[24].mxu0 %vm156_vm0, %v1381_v6 }
 0x715   :  { %2345 = vmatpush3.bf16.xpose.msra.mxu0 %v1463_v7 }
 0x716   :  { %2426 = vmatprep.subr.msk.bf16.mxu0 %vm351_vm1, %v2458_v51 }
 0x71d   :  { %2347 = vmatpush3.bf16.xpose.msra.mxu0 %v1466_v1 }
 0x71e   :  { %2429 = vmatprep.subr.msk.bf16.mxu0 %vm156_vm0, %v2459_v41 }
 0x75b   :  { %v1800_v61 = vpop.xlane.xlu1 %1799 }
 0x75c   :  { %v1810_v8 = vsub.f32 %v1794_v2, %v1800_v61  ;;  %v2527_v2 = vld [vmem:[%s3067_s0 + $0x8] sm:$0xff]  }
 0x75d   :  { %v1803_v37 = vpop.xlane.xlu0 %1802 }
 0x75e   :  { %v1814_v39 = vmul.f32 1.442695, %v1810_v8  ;;  %v1811_v42 = vsub.f32 %v2959_v9, %v1803_v37  ;;  %v2141_v37 = vld [vmem:[%s3079_s12] ss:$0 sm:$0xff]  ;;  %s2528_s12 = scalar_lea.vmem %s2004_s6, 512 }
 0x75f   :  { %v1806_v43 = vpop.xlane.xlu1 %1805  ;;  %p2529_p0 = scmp.ne.s32.totalorder %s2004_s6, %s2528_s12  ;;  %p2534_p2 = scmp.lt.s32.totalorder %s2528_s12, %s2528_s12 }
 0x760   :  { %2510 = vpow2.f32 %v1814_v39  ;;  %v1816_v44 = vmul.f32 1.442695, %v1811_v42  ;;  %v1812_v46 = vsub.f32 %v2963_v13, %v1806_v43 }
 0x761   :  { %v1809_v47 = vpop.xlane.xlu0 %1808  ;;  %p2535_p3 = por %p2534_p2, %p2533_p1 }
 0x762   :  { %2512 = vpow2.f32 %v1816_v44  ;;  %v1818_v48 = vmul.f32 1.442695, %v1812_v46  ;;  %v1813_v49 = vsub.f32 %v2968_v15, %v1809_v47 }
 0x763   :  { %p2536_p4 = pnand %p2535_p3, %p2529_p0 }
 0x764   :  { %2514 = vpow2.f32 %v1818_v48  ;;  %v1820_v50 = vmul.f32 1.442695, %v1813_v49 }
 0x766   :  { %2516 = vpow2.f32 %v1820_v50 }
 0x76a   :  { %v2511_v53 = vpop.eup %2510 }
 0x76b   :  { %v1822_v38 = vsel %vm156_vm0, %v2511_v53, 0.0 }
 0x76c   :  { %v2513_v40 = vpop.eup %2512  ;;  %1823 = vadd.xlane.f32.xlu1 %v1822_v38 }
 0x76d   :  { %v1825_v4 = vsel %vm156_vm0, %v2513_v40, 0.0 }
 0x76e   :  { %v2515_v45 = vpop.eup %2514  ;;  %1826 = vadd.xlane.f32.xlu0 %v1825_v4 }
 0x76f   :  { %v1828_v54 = vsel %vm156_vm0, %v2515_v45, 0.0 }
 0x770   :  { %v2517_v55 = vpop.eup %2516  ;;  %1829 = vadd.xlane.f32.xlu1 %v1828_v54 }
 0x771   :  { %v1831_v56 = vsel %vm156_vm0, %v2517_v55, 0.0 }
 0x772   :  { %1832 = vadd.xlane.f32.xlu0 %v1831_v56 }
 0x7e7   :  { %v2342_v57 = vpop.f32.mrb[24].mxu0 }
 0x7e8   :  { %v1424_v59 = vpop.f32.mrb[25].mxu0 }
 0x7e9   :  { %v2343_v62 = vpop.f32.mrb[26].mxu0 }
 0x7ea   :  { %v1440_v63 = vpack.c.bf16 %v2343_v62, %v2342_v57  ;;  %v1427_v0 = vpop.f32.mrb[27].mxu0 }
 0x7eb   :  { %v1439_v3 = vpack.c.bf16 %v1427_v0, %v1424_v59 }
 0x7ed   :  { %2348 = vmatprep.mubr.msk.bf16.mxu0 %vm351_vm1, %v1439_v3 }
 0x7ee   :  { %2349 = vmatmul.mubr.msk.bf16.vlgmr.msra.gmra.mrb[20].mxu0 %vm351_vm1, %v1440_v63 }
 0x7ef   :  { %2365 = vmatpush3.bf16.xpose.msra.mxu0 %v1674_v58  ;;  %2366 = vmatprep.mubr.msk.bf16.mxu0 %vm156_vm0, %v2526_v60 }
 0x7f6   :  { %2367 = vmatmul.mubr.msk.bf16.vlgmr.msra.gmra.mrb[28].mxu0 %vm156_vm0, %v2527_v2 }
 0x7f9   :  { %v1824_v9 = vpop.xlane.xlu1 %1823 }
 0x7fa   :  { %2518 = vrcp.f32 %v1824_v9 }
 0x7fb   :  { %v1827_v12 = vpop.xlane.xlu0 %1826 }
 0x7fc   :  { %2520 = vrcp.f32 %v1827_v12 }
 0x7fd   :  { %v1830_v18 = vpop.xlane.xlu1 %1829 }
 0x7ff   :  { %v1833_v10 = vpop.xlane.xlu0 %1832 }
 0x800   :  { %2522 = vrcp.f32 %v1833_v10 }
 0x801   :  { %2524 = vrcp.f32 %v1830_v18 }
 0x804   :  { %v2519_v13 = vpop.eup %2518 }
 0x805   :  { %v1835_v15 = vmul.f32 %v2519_v13, %v2511_v53 }
 0x806   :  { %v2521_v14 = vpop.eup %2520 }
 0x807   :  { %v1837_v16 = vmul.f32 %v2521_v14, %v2513_v40 }
 0x809   :  { %v1842_v5 = vpack.c.bf16 %v1837_v16, %v1835_v15 }
 0x80a   :  { %v2523_v30 = vpop.eup %2522 }
 0x80b   :  { %2382 = vmatprep.mubr.msk.bf16.mxu0 %vm156_vm0, %v1842_v5  ;;  %v2525_v31 = vpop.eup %2524  ;;  %v1841_v33 = vmul.f32 %v2523_v30, %v2517_v55 }
 0x80c   :  { %v1839_v28 = vmul.f32 %v2525_v31, %v2515_v45 }
 0x80e   :  { %v1843_v29 = vpack.c.bf16 %v1841_v33, %v1839_v28 }
 0x8c9   :  { %v2368_v11 = vpop.f32.mrb[28].mxu0 }
 0x8ca   :  { %v1710_v20 = vpop.f32.mrb[29].mxu0  ;;  %v1719_v22 = vadd.f32 %v2368_v11, %v2125_v19 }
 0x8cb   :  { %v2369_v21 = vpop.f32.mrb[30].mxu0  ;;  %v1711_v24 = vadd.f32 %v2125_v19, %v1710_v20 }
 0x8cc   :  { %v1722_v17 = vadd.f32 %v2369_v21, %v2125_v19  ;;  %v1713_v23 = vpop.f32.mrb[31].mxu0 }
 0x8cd   :  { %v1714_v25 = vadd.f32 %v2125_v19, %v1713_v23 }
 0x8ce   :  { %v1845_v32 = vpack.c.bf16 %v1722_v17, %v1719_v22 }
 0x8cf   :  { %v1844_v27 = vpack.c.bf16 %v1714_v25, %v1711_v24 }
 0x8d1   :  { %2378 = vmatprep.subr.bf16.mxu0 %v1844_v27 }
 0x8d2   :  { %2379 = vmatpush3.bf16.msra.mxu0 %v1844_v27 }
 0x8d3   :  { %2380 = vmatprep.subr.bf16.mxu0 %v1845_v32 }
 0x8d6   :  { %2381 = vmatpush3.bf16.msra.mxu0 %v1845_v32 }
 0x8d7   :  { %2432 = vmatprep.subr.msk.bf16.mxu0 %vm351_vm1, %v2460_v26 }
 0x8d9   :  { %2383 = vmatmul.mubr.msk.bf16.vlgmr.msra.gmra.mrb[32].mxu0 %vm156_vm0, %v1843_v29 }
 0x8df   :  { %2387 = vmatpush3.bf16.xpose.msra.mxu0 %v1925_v52 }
 0x8e0   :  { %2433 = vmatprep.subr.msk.bf16.mxu0 %vm351_vm1, %v2461_v34 }
 0x8e7   :  { %2389 = vmatpush3.bf16.xpose.msra.mxu0 %v1928_v35 }
 0x9ac   :  { %v2384_v36 = vpop.f32.mrb[32].mxu0 }
 0x9ad   :  { %v1886_v6 = vpop.f32.mrb[33].mxu0 }
 0x9ae   :  { %v2385_v7 = vpop.f32.mrb[34].mxu0 }
 0x9af   :  { %v1902_v51 = vpack.c.bf16 %v2385_v7, %v2384_v36  ;;  %v1889_v61 = vpop.f32.mrb[35].mxu0 }
 0x9b0   :  { %v1901_v8 = vpack.c.bf16 %v1889_v61, %v1886_v6 }
 0x9b2   :  { %2390 = vmatprep.mubr.msk.bf16.mxu0 %vm351_vm1, %v1901_v8 }
 0x9b3   :  { %2391 = vmatmul.mubr.msk.bf16.vlgmr.msra.gmra.mrb[20].mxu0 %vm351_vm1, %v1902_v51 }
 0xa86   :  { %v2392_v39 = vpop.f32.mrb[20].mxu0 }
 0xa87   :  { %v1992_v42 = vadd.f32 %v2392_v39, %v2141_v37  ;;  %v1964_v43 = vpop.f32.mrb[21].mxu0 }
 0xa88   :  { %v1990_v44 = vadd.f32 %v2141_v37, %v1964_v43  ;;  %v2393_v46 = vpop.f32.mrb[22].mxu0 }
 0xa89   :  { %1996 = vst.msk [vmem:[#allocation2 + $0x10] sm:$0xff] %vm156_vm0, %v1992_v42  ;;  %v1993_v47 = vadd.f32 %v2393_v46, %v2141_v37  ;;  %v1967_v48 = vpop.f32.mrb[23].mxu0 }
 0xa8a   :  { %1994 = vst.msk [vmem:[#allocation2] sm:$0xff] %vm156_vm0, %v1990_v44  ;;  %v1991_v49 = vadd.f32 %v2141_v37, %v1967_v48 }
 0xa8b   :  { %1997 = vst.msk [vmem:[#allocation2 + $0x18] sm:$0xff] %vm156_vm0, %v1993_v47 }
 0xa8c   :  { %1995 = vst.msk [vmem:[#allocation2 + $0x8] sm:$0xff] %vm156_vm0, %v1991_v49 }
 0xa8d   :  { %2539 = shalt.err (!%p2536_p4)
}
 0xa8e   :  { %s2540_s14 = scalar_lea.hbm %s3080_s13, 512 }
 0xa8f   :  { %p2541_p5 = scmp.ne.s32.totalorder %s3080_s13, %s2540_s14  ;;  %p2544_p6 = scmp.lt.u32.totalorder %s2540_s14, %s3080_s13 }
 0xa91   :  { %p2546_p7 = pnand %p2544_p6, %p2541_p5 }
 0xa93   :  { %2549 = shalt.err (!%p2546_p7)
}
 0xa94   :  { %s2554_s17 = smov 128   ;;  %s2555_s18 = smov 8  }
 0xa95   :  { %2009 = dma.vmem_to_hbm [thread:$0]  %s2004_s6, 512, %s3080_s13, [#allocation3], %s2554_s17, %s2554_s17, %s2555_s18  }
 0xa96   :  { %2550 = dma.done.wait [#allocation3], 512  }
 0xa97   :  { %2551 = vsyncadd [#allocation3], 4294966784 }
 0xa98   :  { %2013 = vsyncpa [#allocation3], 1 }

</bundles_post_ra>
